<compile_context>
chip_gen: v7x
topology: tpu7x:2x2x1
jax: 0.10.0
libtpu: 0.0.40
codegen_flags: <defaults>
</compile_context>

<pallas_src>
import math
import functools

import jax
import jax.numpy as jnp
import numpy as np
from jax import lax
from jax.experimental import pallas as pl
from jax.experimental.pallas import tpu as pltpu


def _gate_l_kernel(
    x_u_ref, x_t_ref, x_b_ref,            # x        : body rows / top halo row / bottom halo row
    cx_u_ref, cx_t_ref, cx_b_ref,         # cache_x  : body rows / top halo row / bottom halo row
    cy_u_ref, cy_t_ref, cy_b_ref,         # cache_y  : body rows / top halo row / bottom halo row
    dwx_ref, pwx_ref,                     # x-branch depthwise (9,H) f32 and pointwise (H,H//16) bf16
    dwy_ref, pwy_ref,                     # y-branch depthwise (9,H) f32 and pointwise (H,H//16) bf16
    out_ref,                              # (1, 1, 2, H//16) f32 partial pooled sums for this block
    *, hw, rows):
    """Grid = (batch, row_block); one step = R image rows of one batch element."""
    R = rows
    RW = R * hw                            # interior tokens in this block
    f32 = jnp.float32
    rb = pl.program_id(1)
    nrb = pl.num_programs(1)

    # Halo rows outside the image arrive as clamped duplicates (see the halo
    # index_maps).  Zero them so they behave exactly like the conv's zero
    # padding in the row direction (cost: 2*hw rows vs 9*R*hw rows of taps).
    top_f = (rb > 0).astype(f32)
    bot_f = (rb < nrb - 1).astype(f32)

    # Column masks for the dx = +-1 tap groups, built in-kernel (no mask input
    # streams).  col(r) = r % hw is the image column of interior output row r.
    iota = lax.broadcasted_iota(jnp.int32, (RW, 1), 0)
    if hw & (hw - 1) == 0:
        col = jnp.bitwise_and(iota, hw - 1)        # power-of-two fast path
    else:
        col = lax.rem(iota, hw)
    m_left = (col > 0).astype(f32)                 # kills dx = -1 taps at column 0
    m_right = (col < hw - 1).astype(f32)           # kills dx = +1 taps at column hw-1

    def branch(top, body, bot, dw_ref, pw_ref):
        # (R+2)-row flat token window: [halo row | R body rows | halo row], f32.
        win = jnp.concatenate([top, body, bot], axis=0)
        dw = dw_ref[...]                           # (9, H), tap index = (dy+1)*3 + (dx+1)

        def row_slice(dy):
            s = (1 + dy) * hw                      # multiple of hw (>= 8) -> aligned slice
            return win[s:s + RW, :]

        up, mid, dn = row_slice(-1), row_slice(0), row_slice(1)
        # dx groups accumulated over dy with aligned slices (no per-tap rolls).
        g_c = up * dw[1:2] + mid * dw[4:5] + dn * dw[7:8]      # dx =  0
        g_l = up * dw[0:1] + mid * dw[3:4] + dn * dw[6:7]      # dx = -1
        g_r = up * dw[2:3] + mid * dw[5:6] + dn * dw[8:9]      # dx = +1
        # Shift the dx = +-1 group sums by one token (only 2 rolls per branch).
        # Wrapped rows (r = 0 for the left shift, r = RW-1 for the right shift)
        # land exactly on m_left / m_right-masked outputs.
        acc = (g_c
               + pltpu.roll(g_l, shift=1, axis=0) * m_left
               + pltpu.roll(g_r, shift=RW - 1, axis=0) * m_right)
        acc = jnp.maximum(acc, 0.0)                # ReLU
        # 1x1 conv == channel matmul: bf16 MXU operands, f32 accumulation.
        h = jnp.dot(acc.astype(pw_ref.dtype), pw_ref[...],
                    preferred_element_type=jnp.float32)
        h = jnp.maximum(h, 0.0)                    # ReLU
        return jnp.sum(h, axis=0, keepdims=True)   # (1, H//16) partial pooled sum

    # fused = x - cache_x (feature_fuse 'sub'); the subtraction is done in f32
    # so the two bf16-rounded streams are differenced exactly (no extra
    # cancellation error beyond the input rounding itself).
    fx = branch((x_t_ref[0].astype(f32) - cx_t_ref[0].astype(f32)) * top_f,
                x_u_ref[0].astype(f32) - cx_u_ref[0].astype(f32),
                (x_b_ref[0].astype(f32) - cx_b_ref[0].astype(f32)) * bot_f,
                dwx_ref, pwx_ref)
    fy = branch(cy_t_ref[0].astype(f32) * top_f,
                cy_u_ref[0].astype(f32),
                cy_b_ref[0].astype(f32) * bot_f,
                dwy_ref, pwy_ref)

    out_ref[...] = jnp.concatenate([fx, fy], axis=0).reshape(out_ref.shape)


def _tpu_vmem_capacity_bytes():
    """Physical per-core VMEM, with a conservative fallback (v7x = 64 MiB)."""
    try:
        info = pltpu.get_tpu_info()
        cap = getattr(info, "vmem_capacity_bytes", None)
        if cap:
            return int(cap)
    except Exception:
        pass
    return 64 * 1024 * 1024


def _pick_rows_per_block(hw, H):
    """Largest divisor of hw whose working set fits this generation's VMEM.

    Per-row byte estimate (per image row of hw tokens, H channels):
      bf16 double-buffered body inputs (3 arrays)             ~ 12 B
      f32 window + 3 tap-group sums + 2 rolled copies +
      conv accumulator + bf16 matmul operand                  ~ 36 B
    -> ~48 B per (row*hw*H).  Target ~35% of physical VMEM so double-buffering
    and compiler scratch keep headroom: much larger row blocks on v5e/v6e's
    128 MiB than on v7x's 64 MiB.
    """
    cap = _tpu_vmem_capacity_bytes()
    budget = int(cap * 0.35)
    per_row = 48 * hw * H
    max_rows = max(1, budget // per_row - 2)
    best = 1
    for d in range(1, hw + 1):
        if hw % d == 0 and d <= max_rows:
            best = d
    return best


def _vmem_limit_bytes():
    cap = _tpu_vmem_capacity_bytes()
    return int(min(cap * 3 // 4, 100 * 1024 * 1024))


def gate_l_forward(x, cache_x, cache_y, params, *, tau=1.0, rows_per_block=None):
    """x, cache_x, cache_y: (B, N, H) with N = hw*hw spatial tokens, channel-last.

    Token layout matches the PyTorch NCHW image: image[b, c, i, j] == x[b, i*hw + j, c].
    Returns (gate, logit), gate being the module's forward output.
    """
    B, N, H = x.shape
    hw = int(math.isqrt(N))
    assert hw * hw == N, "num_tokens must be a perfect square"
    assert hw % 8 == 0, "kernel assumes the image side is a multiple of 8"
    # TODO(synk): support hw % 8 != 0 (needs padded row slabs for sublane alignment).
    cout = H // 16

    dw_x, pw_x, dw_y, pw_y, cw, cb = params
    assert dw_x.shape == (9, H) and dw_y.shape == (9, H)
    assert pw_x.shape == (H, cout) and pw_y.shape == (H, cout)
    assert cw.shape == (1, 2 * cout) and cb.shape == (1,)

    R = rows_per_block if rows_per_block is not None else _pick_rows_per_block(hw, H)
    assert hw % R == 0, "rows_per_block must divide the image side"
    nrb = hw // R

    # Stream the three big activations as bf16 (halves the HBM-bound bytes);
    # depthwise weights stay f32 (f32 VPU tap math), pointwise weights go to
    # the MXU in bf16.
    bf16 = jnp.bfloat16
    xs, cxs, cys = x.astype(bf16), cache_x.astype(bf16), cache_y.astype(bf16)
    dwx, dwy = dw_x.astype(jnp.float32), dw_y.astype(jnp.float32)
    pwx, pwy = pw_x.astype(bf16), pw_y.astype(bf16)

    kernel = functools.partial(_gate_l_kernel, hw=hw, rows=R)

    # Body block = R image rows; halo blocks = single image rows above/below,
    # clamped at the image boundary (the kernel zeroes the clamped duplicates).
    body_spec = pl.BlockSpec((1, R * hw, H), lambda b, rb: (b, rb, 0))
    top_spec = pl.BlockSpec((1, hw, H),
                            lambda b, rb: (b, jnp.maximum(rb * R - 1, 0), 0))
    bot_spec = pl.BlockSpec((1, hw, H),
                            lambda b, rb: (b, jnp.minimum(rb * R + R, hw - 1), 0))
    wspec = lambda shape: pl.BlockSpec(shape, lambda b, rb: (0,) * len(shape))

    partial = pl.pallas_call(
        kernel,
        out_shape=jax.ShapeDtypeStruct((B, nrb, 2, cout), jnp.float32),
        grid_spec=pltpu.PrefetchScalarGridSpec(
            num_scalar_prefetch=0,
            grid=(B, nrb),
            in_specs=[
                body_spec, top_spec, bot_spec,       # x
                body_spec, top_spec, bot_spec,       # cache_x
                body_spec, top_spec, bot_spec,       # cache_y
                wspec((9, H)), wspec((H, cout)),     # dw_x, pw_x
                wspec((9, H)), wspec((H, cout)),     # dw_y, pw_y
            ],
            out_specs=pl.BlockSpec((1, 1, 2, cout), lambda b, rb: (b, rb, 0, 0)),
        ),
        compiler_params=pltpu.CompilerParams(
            dimension_semantics=("parallel", "parallel"),
            vmem_limit_bytes=_vmem_limit_bytes()),
    )(xs, xs, xs, cxs, cxs, cxs, cys, cys, cys, dwx, pwx, dwy, pwy)

    # AdaptiveAvgPool2d((1,1)) + Linear + GumbelSigmoid(hard, noise=False):
    # microscopic epilogue kept in plain JAX so both grid axes stay 'parallel'.
    pooled = jnp.sum(partial, axis=1) / jnp.float32(N)        # (B, 2, cout)
    feats = pooled.reshape(B, 2 * cout)                       # [x-branch | y-branch]
    logit = feats @ cw[0].astype(jnp.float32) + cb[0]         # (B,)
    gate = (jax.nn.sigmoid(logit / tau) > 0.5).astype(jnp.float32)
    return gate, logit


def _reference_forward(x, cache_x, cache_y, params, *, tau=1.0):
    """Pure-JAX mirror of the PyTorch NCHW computation; returns (gate, logit)."""
    B, N, H = x.shape
    hw = int(math.isqrt(N))
    dw_x, pw_x, dw_y, pw_y, cw, cb = params

    def branch(tokens, dw, pw):                               # dw:(9,H)  pw:(H,Cout)
        img = jnp.transpose(tokens, (0, 2, 1)).reshape(B, H, hw, hw)   # NCHW
        pad = jnp.pad(img, ((0, 0), (0, 0), (1, 1), (1, 1)))
        out = jnp.zeros_like(img)
        for ky in range(3):
            for kx in range(3):
                w = dw[ky * 3 + kx]                           # (H,)
                out = out + pad[:, :, ky:ky + hw, kx:kx + hw] * w[None, :, None, None]
        out = jnp.maximum(out, 0.0)
        h = jnp.einsum('bchw,co->bohw', out, pw)
        h = jnp.maximum(h, 0.0)
        return h.mean(axis=(2, 3))                            # (B, Cout)

    xf = branch(x - cache_x, dw_x, pw_x)
    yf = branch(cache_y, dw_y, pw_y)
    feats = jnp.concatenate([xf, yf], axis=-1)                # (B, 2*Cout)
    logit = feats @ cw[0] + cb[0]                             # (B,)
    gate = (jax.nn.sigmoid(logit / tau) > 0.5).astype(jnp.float32)
    return gate, logit


def make_params(key, H):
    """Synthetic parameters matching gate_L's layer shapes (fuse_type='sub'):
      dwconv:    Conv2d(H, H, 3, groups=H, bias=False)  -> weight (H,1,3,3)
      pointwise: Conv2d(H, H//16, 1, bias=False)        -> weight (H//16,H,1,1)
      clas:      Linear(2*(H//16), 1, bias=True)
    Reformatted for the kernel layout (tap = ky*3 + kx, channel-last matmuls)."""
    cout = H // 16
    ks = jax.random.split(key, 6)
    dw_x_t = 0.1 * jax.random.normal(ks[0], (H, 3, 3), jnp.float32)
    dw_y_t = 0.1 * jax.random.normal(ks[1], (H, 3, 3), jnp.float32)
    pw_x_t = 0.1 * jax.random.normal(ks[2], (cout, H), jnp.float32)
    pw_y_t = 0.1 * jax.random.normal(ks[3], (cout, H), jnp.float32)
    cw = 0.5 * jax.random.normal(ks[4], (1, 2 * cout), jnp.float32)
    cb = 0.1 * jax.random.normal(ks[5], (1,), jnp.float32)

    dw_x = dw_x_t.reshape(H, 9).T          # (9, H)
    dw_y = dw_y_t.reshape(H, 9).T
    pw_x = pw_x_t.T                        # (H, Cout)
    pw_y = pw_y_t.T
    return dw_x, pw_x, dw_y, pw_y, cw, cb


if __name__ == "__main__":
    # Small shapes consistent with gate_L: hidden_size divisible by 16,
    # num_tokens a perfect square with side divisible by 8.
    B, hw, H = 2, 8, 128
    N = hw * hw
    tau = 1.0

    key = jax.random.PRNGKey(0)
    kx, kcx, kcy, kp = jax.random.split(key, 4)
    x = jax.random.normal(kx, (B, N, H), jnp.float32)
    cache_x = jax.random.normal(kcx, (B, N, H), jnp.float32)
    cache_y = jax.random.normal(kcy, (B, N, H), jnp.float32)
    params = make_params(kp, H)

    # Reference mirrors what the kernel actually consumes: bf16-rounded
    # activations and bf16-rounded pointwise weights (depthwise weights and the
    # tap math stay f32 in the kernel, so they are not rounded here).
    rt = lambda a: a.astype(jnp.bfloat16).astype(jnp.float32)
    dw_x, pw_x, dw_y, pw_y, cw, cb = params
    params_ref = (dw_x, rt(pw_x), dw_y, rt(pw_y), cw, cb)
    ref_gate, ref_logit = _reference_forward(rt(x), rt(cache_x), rt(cache_y),
                                             params_ref, tau=tau)
    ref_gate = np.asarray(jax.block_until_ready(ref_gate))
    ref_logit = np.asarray(ref_logit)

    # rows_per_block=4 exercises the multi-row-block path (grid = (B, 2));
    # None exercises the auto-sized (generation-aware) path.
    for rpb in (4, None):
        gate, logit = gate_l_forward(x, cache_x, cache_y, params,
                                     tau=tau, rows_per_block=rpb)
        gate = np.asarray(jax.block_until_ready(gate))
        logit = np.asarray(logit)
        assert gate.shape == (B,), gate.shape
        assert np.all((gate == 0.0) | (gate == 1.0))
        # The logit is reconstructed in f32 JAX from the kernel's partial pooled
        # sums; only the bf16 MXU-operand rounding differs from the reference.
        np.testing.assert_allclose(logit, ref_logit, rtol=2e-2, atol=2e-2)
        # Hard gate: compare away from the 0.5 threshold (rounding could flip a
        # razor-thin logit).
        safe = np.abs(ref_logit) > 5e-2
        np.testing.assert_array_equal(gate[safe], ref_gate[safe])

    print("KERNEL_OK")
</pallas_src>

<mosaic_0001>
module attributes {stable_mosaic.version = 11 : i64} {
  func.func @_gate_l_kernel(%arg0: i32, %arg1: i32, %arg2: memref<1x32x128xbf16, #tpu.memory_space<vmem>>, %arg3: memref<1x8x128xbf16, #tpu.memory_space<vmem>>, %arg4: memref<1x8x128xbf16, #tpu.memory_space<vmem>>, %arg5: memref<1x32x128xbf16, #tpu.memory_space<vmem>>, %arg6: memref<1x8x128xbf16, #tpu.memory_space<vmem>>, %arg7: memref<1x8x128xbf16, #tpu.memory_space<vmem>>, %arg8: memref<1x32x128xbf16, #tpu.memory_space<vmem>>, %arg9: memref<1x8x128xbf16, #tpu.memory_space<vmem>>, %arg10: memref<1x8x128xbf16, #tpu.memory_space<vmem>>, %arg11: memref<9x128xf32, #tpu.memory_space<vmem>>, %arg12: memref<128x8xbf16, #tpu.memory_space<vmem>>, %arg13: memref<9x128xf32, #tpu.memory_space<vmem>>, %arg14: memref<128x8xbf16, #tpu.memory_space<vmem>>, %arg15: memref<1x1x2x8xf32, #tpu.memory_space<vmem>>) attributes {dimension_semantics = [#tpu.dimension_semantics<parallel>, #tpu.dimension_semantics<parallel>], iteration_bounds = array<i64: 2, 2>, scalar_prefetch = 0 : i64, scratch_operands = 0 : i64, tpu.core_type = #tpu.core_type<tc>, window_params = [{transform_indices = @transform_0, window_bounds = array<i64: 1, 32, 128>}, {transform_indices = @transform_1, window_bounds = array<i64: 1, 8, 128>}, {transform_indices = @transform_2, window_bounds = array<i64: 1, 8, 128>}, {transform_indices = @transform_3, window_bounds = array<i64: 1, 32, 128>}, {transform_indices = @transform_4, window_bounds = array<i64: 1, 8, 128>}, {transform_indices = @transform_5, window_bounds = array<i64: 1, 8, 128>}, {transform_indices = @transform_6, window_bounds = array<i64: 1, 32, 128>}, {transform_indices = @transform_7, window_bounds = array<i64: 1, 8, 128>}, {transform_indices = @transform_8, window_bounds = array<i64: 1, 8, 128>}, {pipeline_mode = #tpu.pipeline_mode<synchronous>, transform_indices = @transform_9, window_bounds = array<i64: 9, 128>}, {pipeline_mode = #tpu.pipeline_mode<synchronous>, transform_indices = @transform_10, window_bounds = array<i64: 128, 8>}, {pipeline_mode = #tpu.pipeline_mode<synchronous>, transform_indices = @transform_11, window_bounds = array<i64: 9, 128>}, {pipeline_mode = #tpu.pipeline_mode<synchronous>, transform_indices = @transform_12, window_bounds = array<i64: 128, 8>}, {transform_indices = @transform_13, window_bounds = array<i64: 1, 1, 2, 8>}]} {
    %c0_i32 = arith.constant 0 : i32
    %0 = arith.cmpi sgt, %arg1, %c0_i32 : i32
    %1 = arith.extui %0 : i1 to i32
    %2 = arith.sitofp %1 : i32 to f32
    %c1_i32 = arith.constant 1 : i32
    %3 = arith.cmpi slt, %arg1, %c1_i32 : i32
    %4 = arith.extui %3 : i1 to i32
    %5 = arith.sitofp %4 : i32 to f32
    %6 = tpu.iota {dimensions = array<i32: 0>} : vector<32x1xi32>
    %c7_i32 = arith.constant 7 : i32
    %7 = vector.broadcast %c7_i32 : i32 to vector<32x1xi32>
    %8 = arith.andi %6, %7 : vector<32x1xi32>
    %c0_i32_0 = arith.constant 0 : i32
    %9 = vector.broadcast %c0_i32_0 : i32 to vector<32x1xi32>
    %10 = arith.cmpi sgt, %8, %9 : vector<32x1xi32>
    %11 = arith.extui %10 : vector<32x1xi1> to vector<32x1xi32>
    %12 = arith.sitofp %11 : vector<32x1xi32> to vector<32x1xf32>
    %c7_i32_1 = arith.constant 7 : i32
    %13 = vector.broadcast %c7_i32_1 : i32 to vector<32x1xi32>
    %14 = arith.cmpi slt, %8, %13 : vector<32x1xi32>
    %15 = arith.extui %14 : vector<32x1xi1> to vector<32x1xi32>
    %16 = arith.sitofp %15 : vector<32x1xi32> to vector<32x1xf32>
    %c0 = arith.constant 0 : index
    %c0_2 = arith.constant 0 : index
    %c0_3 = arith.constant 0 : index
    %17 = vector.load %arg3[%c0, %c0_2, %c0_3] : memref<1x8x128xbf16, #tpu.memory_space<vmem>>, vector<1x8x128xbf16>
    %18 = vector.shape_cast %17 : vector<1x8x128xbf16> to vector<8x128xbf16>
    %19 = arith.extf %18 : vector<8x128xbf16> to vector<8x128xf32>
    %c0_4 = arith.constant 0 : index
    %c0_5 = arith.constant 0 : index
    %c0_6 = arith.constant 0 : index
    %20 = vector.load %arg6[%c0_4, %c0_5, %c0_6] : memref<1x8x128xbf16, #tpu.memory_space<vmem>>, vector<1x8x128xbf16>
    %21 = vector.shape_cast %20 : vector<1x8x128xbf16> to vector<8x128xbf16>
    %22 = arith.extf %21 : vector<8x128xbf16> to vector<8x128xf32>
    %23 = arith.subf %19, %22 : vector<8x128xf32>
    %24 = vector.broadcast %2 : f32 to vector<8x128xf32>
    %25 = arith.mulf %23, %24 : vector<8x128xf32>
    %c0_7 = arith.constant 0 : index
    %c0_8 = arith.constant 0 : index
    %c0_9 = arith.constant 0 : index
    %26 = vector.load %arg2[%c0_7, %c0_8, %c0_9] : memref<1x32x128xbf16, #tpu.memory_space<vmem>>, vector<1x32x128xbf16>
    %27 = vector.shape_cast %26 : vector<1x32x128xbf16> to vector<32x128xbf16>
    %28 = arith.extf %27 : vector<32x128xbf16> to vector<32x128xf32>
    %c0_10 = arith.constant 0 : index
    %c0_11 = arith.constant 0 : index
    %c0_12 = arith.constant 0 : index
    %29 = vector.load %arg5[%c0_10, %c0_11, %c0_12] : memref<1x32x128xbf16, #tpu.memory_space<vmem>>, vector<1x32x128xbf16>
    %30 = vector.shape_cast %29 : vector<1x32x128xbf16> to vector<32x128xbf16>
    %31 = arith.extf %30 : vector<32x128xbf16> to vector<32x128xf32>
    %32 = arith.subf %28, %31 : vector<32x128xf32>
    %c0_13 = arith.constant 0 : index
    %c0_14 = arith.constant 0 : index
    %c0_15 = arith.constant 0 : index
    %33 = vector.load %arg4[%c0_13, %c0_14, %c0_15] : memref<1x8x128xbf16, #tpu.memory_space<vmem>>, vector<1x8x128xbf16>
    %34 = vector.shape_cast %33 : vector<1x8x128xbf16> to vector<8x128xbf16>
    %35 = arith.extf %34 : vector<8x128xbf16> to vector<8x128xf32>
    %c0_16 = arith.constant 0 : index
    %c0_17 = arith.constant 0 : index
    %c0_18 = arith.constant 0 : index
    %36 = vector.load %arg7[%c0_16, %c0_17, %c0_18] : memref<1x8x128xbf16, #tpu.memory_space<vmem>>, vector<1x8x128xbf16>
    %37 = vector.shape_cast %36 : vector<1x8x128xbf16> to vector<8x128xbf16>
    %38 = arith.extf %37 : vector<8x128xbf16> to vector<8x128xf32>
    %39 = arith.subf %35, %38 : vector<8x128xf32>
    %40 = vector.broadcast %5 : f32 to vector<8x128xf32>
    %41 = arith.mulf %39, %40 : vector<8x128xf32>
    %42 = tpu.concatenate %25, %32, %41 in 0 : vector<8x128xf32>, vector<32x128xf32>, vector<8x128xf32> -> vector<48x128xf32>
    %c0_19 = arith.constant 0 : index
    %c0_20 = arith.constant 0 : index
    %43 = vector.load %arg11[%c0_19, %c0_20] : memref<9x128xf32, #tpu.memory_space<vmem>>, vector<9x128xf32>
    %44 = vector.extract_strided_slice %42 {offsets = [0, 0], sizes = [32, 128], strides = [1, 1]} : vector<48x128xf32> to vector<32x128xf32>
    %45 = vector.extract_strided_slice %42 {offsets = [8, 0], sizes = [32, 128], strides = [1, 1]} : vector<48x128xf32> to vector<32x128xf32>
    %46 = vector.extract_strided_slice %42 {offsets = [16, 0], sizes = [32, 128], strides = [1, 1]} : vector<48x128xf32> to vector<32x128xf32>
    %47 = vector.extract_strided_slice %43 {offsets = [1, 0], sizes = [1, 128], strides = [1, 1]} : vector<9x128xf32> to vector<1x128xf32>
    %48 = vector.broadcast %47 : vector<1x128xf32> to vector<32x128xf32>
    %49 = arith.mulf %44, %48 : vector<32x128xf32>
    %50 = vector.extract_strided_slice %43 {offsets = [4, 0], sizes = [1, 128], strides = [1, 1]} : vector<9x128xf32> to vector<1x128xf32>
    %51 = vector.broadcast %50 : vector<1x128xf32> to vector<32x128xf32>
    %52 = arith.mulf %45, %51 : vector<32x128xf32>
    %53 = arith.addf %49, %52 : vector<32x128xf32>
    %54 = vector.extract_strided_slice %43 {offsets = [7, 0], sizes = [1, 128], strides = [1, 1]} : vector<9x128xf32> to vector<1x128xf32>
    %55 = vector.broadcast %54 : vector<1x128xf32> to vector<32x128xf32>
    %56 = arith.mulf %46, %55 : vector<32x128xf32>
    %57 = arith.addf %53, %56 : vector<32x128xf32>
    %58 = vector.extract_strided_slice %43 {offsets = [0, 0], sizes = [1, 128], strides = [1, 1]} : vector<9x128xf32> to vector<1x128xf32>
    %59 = vector.broadcast %58 : vector<1x128xf32> to vector<32x128xf32>
    %60 = arith.mulf %44, %59 : vector<32x128xf32>
    %61 = vector.extract_strided_slice %43 {offsets = [3, 0], sizes = [1, 128], strides = [1, 1]} : vector<9x128xf32> to vector<1x128xf32>
    %62 = vector.broadcast %61 : vector<1x128xf32> to vector<32x128xf32>
    %63 = arith.mulf %45, %62 : vector<32x128xf32>
    %64 = arith.addf %60, %63 : vector<32x128xf32>
    %65 = vector.extract_strided_slice %43 {offsets = [6, 0], sizes = [1, 128], strides = [1, 1]} : vector<9x128xf32> to vector<1x128xf32>
    %66 = vector.broadcast %65 : vector<1x128xf32> to vector<32x128xf32>
    %67 = arith.mulf %46, %66 : vector<32x128xf32>
    %68 = arith.addf %64, %67 : vector<32x128xf32>
    %69 = vector.extract_strided_slice %43 {offsets = [2, 0], sizes = [1, 128], strides = [1, 1]} : vector<9x128xf32> to vector<1x128xf32>
    %70 = vector.broadcast %69 : vector<1x128xf32> to vector<32x128xf32>
    %71 = arith.mulf %44, %70 : vector<32x128xf32>
    %72 = vector.extract_strided_slice %43 {offsets = [5, 0], sizes = [1, 128], strides = [1, 1]} : vector<9x128xf32> to vector<1x128xf32>
    %73 = vector.broadcast %72 : vector<1x128xf32> to vector<32x128xf32>
    %74 = arith.mulf %45, %73 : vector<32x128xf32>
    %75 = arith.addf %71, %74 : vector<32x128xf32>
    %76 = vector.extract_strided_slice %43 {offsets = [8, 0], sizes = [1, 128], strides = [1, 1]} : vector<9x128xf32> to vector<1x128xf32>
    %77 = vector.broadcast %76 : vector<1x128xf32> to vector<32x128xf32>
    %78 = arith.mulf %46, %77 : vector<32x128xf32>
    %79 = arith.addf %75, %78 : vector<32x128xf32>
    %c1_i32_21 = arith.constant 1 : i32
    %80 = tpu.dynamic_rotate %68 by %c1_i32_21 dim 0 : vector<32x128xf32>, i32 -> vector<32x128xf32>
    %81 = vector.broadcast %12 : vector<32x1xf32> to vector<32x128xf32>
    %82 = arith.mulf %80, %81 : vector<32x128xf32>
    %83 = arith.addf %57, %82 : vector<32x128xf32>
    %c31_i32 = arith.constant 31 : i32
    %84 = tpu.dynamic_rotate %79 by %c31_i32 dim 0 : vector<32x128xf32>, i32 -> vector<32x128xf32>
    %85 = vector.broadcast %16 : vector<32x1xf32> to vector<32x128xf32>
    %86 = arith.mulf %84, %85 : vector<32x128xf32>
    %87 = arith.addf %83, %86 : vector<32x128xf32>
    %cst = arith.constant 0.000000e+00 : f32
    %88 = vector.broadcast %cst : f32 to vector<32x128xf32>
    %89 = arith.maximumf %87, %88 : vector<32x128xf32>
    %90 = arith.truncf %89 : vector<32x128xf32> to vector<32x128xbf16>
    %c0_22 = arith.constant 0 : index
    %c0_23 = arith.constant 0 : index
    %91 = vector.load %arg12[%c0_22, %c0_23] : memref<128x8xbf16, #tpu.memory_space<vmem>>, vector<128x8xbf16>
    %cst_24 = arith.constant dense<0.000000e+00> : vector<32x8xf32>
    %92 = tpu.matmul %90, %91, %cst_24 {dimension_numbers = #tpu.dot_dimension_numbers<[1], [0], [0], [1], [0, 0, 1, 1], [], []>} : vector<32x128xbf16>, vector<128x8xbf16>, vector<32x8xf32> -> vector<32x8xf32>
    %cst_25 = arith.constant 0.000000e+00 : f32
    %93 = vector.broadcast %cst_25 : f32 to vector<32x8xf32>
    %94 = arith.maximumf %92, %93 : vector<32x8xf32>
    %cst_26 = arith.constant dense<0.000000e+00> : vector<8xf32>
    %95 = vector.multi_reduction <add>, %94, %cst_26 [0] : vector<32x8xf32> to vector<8xf32>
    %96 = vector.shape_cast %95 : vector<8xf32> to vector<1x8xf32>
    %c0_27 = arith.constant 0 : index
    %c0_28 = arith.constant 0 : index
    %c0_29 = arith.constant 0 : index
    %97 = vector.load %arg9[%c0_27, %c0_28, %c0_29] : memref<1x8x128xbf16, #tpu.memory_space<vmem>>, vector<1x8x128xbf16>
    %98 = vector.shape_cast %97 : vector<1x8x128xbf16> to vector<8x128xbf16>
    %99 = arith.extf %98 : vector<8x128xbf16> to vector<8x128xf32>
    %100 = vector.broadcast %2 : f32 to vector<8x128xf32>
    %101 = arith.mulf %99, %100 : vector<8x128xf32>
    %c0_30 = arith.constant 0 : index
    %c0_31 = arith.constant 0 : index
    %c0_32 = arith.constant 0 : index
    %102 = vector.load %arg8[%c0_30, %c0_31, %c0_32] : memref<1x32x128xbf16, #tpu.memory_space<vmem>>, vector<1x32x128xbf16>
    %103 = vector.shape_cast %102 : vector<1x32x128xbf16> to vector<32x128xbf16>
    %104 = arith.extf %103 : vector<32x128xbf16> to vector<32x128xf32>
    %c0_33 = arith.constant 0 : index
    %c0_34 = arith.constant 0 : index
    %c0_35 = arith.constant 0 : index
    %105 = vector.load %arg10[%c0_33, %c0_34, %c0_35] : memref<1x8x128xbf16, #tpu.memory_space<vmem>>, vector<1x8x128xbf16>
    %106 = vector.shape_cast %105 : vector<1x8x128xbf16> to vector<8x128xbf16>
    %107 = arith.extf %106 : vector<8x128xbf16> to vector<8x128xf32>
    %108 = vector.broadcast %5 : f32 to vector<8x128xf32>
    %109 = arith.mulf %107, %108 : vector<8x128xf32>
    %110 = tpu.concatenate %101, %104, %109 in 0 : vector<8x128xf32>, vector<32x128xf32>, vector<8x128xf32> -> vector<48x128xf32>
    %c0_36 = arith.constant 0 : index
    %c0_37 = arith.constant 0 : index
    %111 = vector.load %arg13[%c0_36, %c0_37] : memref<9x128xf32, #tpu.memory_space<vmem>>, vector<9x128xf32>
    %112 = vector.extract_strided_slice %110 {offsets = [0, 0], sizes = [32, 128], strides = [1, 1]} : vector<48x128xf32> to vector<32x128xf32>
    %113 = vector.extract_strided_slice %110 {offsets = [8, 0], sizes = [32, 128], strides = [1, 1]} : vector<48x128xf32> to vector<32x128xf32>
    %114 = vector.extract_strided_slice %110 {offsets = [16, 0], sizes = [32, 128], strides = [1, 1]} : vector<48x128xf32> to vector<32x128xf32>
    %115 = vector.extract_strided_slice %111 {offsets = [1, 0], sizes = [1, 128], strides = [1, 1]} : vector<9x128xf32> to vector<1x128xf32>
    %116 = vector.broadcast %115 : vector<1x128xf32> to vector<32x128xf32>
    %117 = arith.mulf %112, %116 : vector<32x128xf32>
    %118 = vector.extract_strided_slice %111 {offsets = [4, 0], sizes = [1, 128], strides = [1, 1]} : vector<9x128xf32> to vector<1x128xf32>
    %119 = vector.broadcast %118 : vector<1x128xf32> to vector<32x128xf32>
    %120 = arith.mulf %113, %119 : vector<32x128xf32>
    %121 = arith.addf %117, %120 : vector<32x128xf32>
    %122 = vector.extract_strided_slice %111 {offsets = [7, 0], sizes = [1, 128], strides = [1, 1]} : vector<9x128xf32> to vector<1x128xf32>
    %123 = vector.broadcast %122 : vector<1x128xf32> to vector<32x128xf32>
    %124 = arith.mulf %114, %123 : vector<32x128xf32>
    %125 = arith.addf %121, %124 : vector<32x128xf32>
    %126 = vector.extract_strided_slice %111 {offsets = [0, 0], sizes = [1, 128], strides = [1, 1]} : vector<9x128xf32> to vector<1x128xf32>
    %127 = vector.broadcast %126 : vector<1x128xf32> to vector<32x128xf32>
    %128 = arith.mulf %112, %127 : vector<32x128xf32>
    %129 = vector.extract_strided_slice %111 {offsets = [3, 0], sizes = [1, 128], strides = [1, 1]} : vector<9x128xf32> to vector<1x128xf32>
    %130 = vector.broadcast %129 : vector<1x128xf32> to vector<32x128xf32>
    %131 = arith.mulf %113, %130 : vector<32x128xf32>
    %132 = arith.addf %128, %131 : vector<32x128xf32>
    %133 = vector.extract_strided_slice %111 {offsets = [6, 0], sizes = [1, 128], strides = [1, 1]} : vector<9x128xf32> to vector<1x128xf32>
    %134 = vector.broadcast %133 : vector<1x128xf32> to vector<32x128xf32>
    %135 = arith.mulf %114, %134 : vector<32x128xf32>
    %136 = arith.addf %132, %135 : vector<32x128xf32>
    %137 = vector.extract_strided_slice %111 {offsets = [2, 0], sizes = [1, 128], strides = [1, 1]} : vector<9x128xf32> to vector<1x128xf32>
    %138 = vector.broadcast %137 : vector<1x128xf32> to vector<32x128xf32>
    %139 = arith.mulf %112, %138 : vector<32x128xf32>
    %140 = vector.extract_strided_slice %111 {offsets = [5, 0], sizes = [1, 128], strides = [1, 1]} : vector<9x128xf32> to vector<1x128xf32>
    %141 = vector.broadcast %140 : vector<1x128xf32> to vector<32x128xf32>
    %142 = arith.mulf %113, %141 : vector<32x128xf32>
    %143 = arith.addf %139, %142 : vector<32x128xf32>
    %144 = vector.extract_strided_slice %111 {offsets = [8, 0], sizes = [1, 128], strides = [1, 1]} : vector<9x128xf32> to vector<1x128xf32>
    %145 = vector.broadcast %144 : vector<1x128xf32> to vector<32x128xf32>
    %146 = arith.mulf %114, %145 : vector<32x128xf32>
    %147 = arith.addf %143, %146 : vector<32x128xf32>
    %c1_i32_38 = arith.constant 1 : i32
    %148 = tpu.dynamic_rotate %136 by %c1_i32_38 dim 0 : vector<32x128xf32>, i32 -> vector<32x128xf32>
    %149 = vector.broadcast %12 : vector<32x1xf32> to vector<32x128xf32>
    %150 = arith.mulf %148, %149 : vector<32x128xf32>
    %151 = arith.addf %125, %150 : vector<32x128xf32>
    %c31_i32_39 = arith.constant 31 : i32
    %152 = tpu.dynamic_rotate %147 by %c31_i32_39 dim 0 : vector<32x128xf32>, i32 -> vector<32x128xf32>
    %153 = vector.broadcast %16 : vector<32x1xf32> to vector<32x128xf32>
    %154 = arith.mulf %152, %153 : vector<32x128xf32>
    %155 = arith.addf %151, %154 : vector<32x128xf32>
    %cst_40 = arith.constant 0.000000e+00 : f32
    %156 = vector.broadcast %cst_40 : f32 to vector<32x128xf32>
    %157 = arith.maximumf %155, %156 : vector<32x128xf32>
    %158 = arith.truncf %157 : vector<32x128xf32> to vector<32x128xbf16>
    %c0_41 = arith.constant 0 : index
    %c0_42 = arith.constant 0 : index
    %159 = vector.load %arg14[%c0_41, %c0_42] : memref<128x8xbf16, #tpu.memory_space<vmem>>, vector<128x8xbf16>
    %cst_43 = arith.constant dense<0.000000e+00> : vector<32x8xf32>
    %160 = tpu.matmul %158, %159, %cst_43 {dimension_numbers = #tpu.dot_dimension_numbers<[1], [0], [0], [1], [0, 0, 1, 1], [], []>} : vector<32x128xbf16>, vector<128x8xbf16>, vector<32x8xf32> -> vector<32x8xf32>
    %cst_44 = arith.constant 0.000000e+00 : f32
    %161 = vector.broadcast %cst_44 : f32 to vector<32x8xf32>
    %162 = arith.maximumf %160, %161 : vector<32x8xf32>
    %cst_45 = arith.constant dense<0.000000e+00> : vector<8xf32>
    %163 = vector.multi_reduction <add>, %162, %cst_45 [0] : vector<32x8xf32> to vector<8xf32>
    %164 = vector.shape_cast %163 : vector<8xf32> to vector<1x8xf32>
    %165 = tpu.concatenate %96, %164 in 0 : vector<1x8xf32>, vector<1x8xf32> -> vector<2x8xf32>
    %166 = vector.shape_cast %165 : vector<2x8xf32> to vector<1x1x2x8xf32>
    %c0_46 = arith.constant 0 : index
    %c0_47 = arith.constant 0 : index
    %c0_48 = arith.constant 0 : index
    %c0_49 = arith.constant 0 : index
    %167 = vector.load %arg15[%c0_46, %c0_47, %c0_48, %c0_49] : memref<1x1x2x8xf32, #tpu.memory_space<vmem>>, vector<1x1x2x8xf32>
    tpu.vector_store %arg15[%c0_46, %c0_47, %c0_48, %c0_49], %166 {strides = array<i32>} : memref<1x1x2x8xf32, #tpu.memory_space<vmem>>, vector<1x1x2x8xf32>,
    return
  }
  func.func @transform_0(%arg0: i32, %arg1: i32) -> (i32, i32, i32) {
    %c0_i32 = arith.constant 0 : i32
    %c0_i32_0 = arith.constant 0 : i32
    return %arg0, %arg1, %c0_i32 : i32, i32, i32
  }
  func.func @transform_1(%arg0: i32, %arg1: i32) -> (i32, i32, i32) {
    %c4_i32 = arith.constant 4 : i32
    %0 = arith.muli %arg1, %c4_i32 : i32
    %c1_i32 = arith.constant 1 : i32
    %1 = arith.subi %0, %c1_i32 : i32
    %c0_i32 = arith.constant 0 : i32
    %2 = arith.maxsi %1, %c0_i32 : i32
    %c0_i32_0 = arith.constant 0 : i32
    %c0_i32_1 = arith.constant 0 : i32
    return %arg0, %2, %c0_i32_0 : i32, i32, i32
  }
  func.func @transform_2(%arg0: i32, %arg1: i32) -> (i32, i32, i32) {
    %c4_i32 = arith.constant 4 : i32
    %0 = arith.muli %arg1, %c4_i32 : i32
    %c4_i32_0 = arith.constant 4 : i32
    %1 = arith.addi %0, %c4_i32_0 : i32
    %c7_i32 = arith.constant 7 : i32
    %2 = arith.minsi %1, %c7_i32 : i32
    %c0_i32 = arith.constant 0 : i32
    %c0_i32_1 = arith.constant 0 : i32
    return %arg0, %2, %c0_i32 : i32, i32, i32
  }
  func.func @transform_3(%arg0: i32, %arg1: i32) -> (i32, i32, i32) {
    %c0_i32 = arith.constant 0 : i32
    %c0_i32_0 = arith.constant 0 : i32
    return %arg0, %arg1, %c0_i32 : i32, i32, i32
  }
  func.func @transform_4(%arg0: i32, %arg1: i32) -> (i32, i32, i32) {
    %c4_i32 = arith.constant 4 : i32
    %0 = arith.muli %arg1, %c4_i32 : i32
    %c1_i32 = arith.constant 1 : i32
    %1 = arith.subi %0, %c1_i32 : i32
    %c0_i32 = arith.constant 0 : i32
    %2 = arith.maxsi %1, %c0_i32 : i32
    %c0_i32_0 = arith.constant 0 : i32
    %c0_i32_1 = arith.constant 0 : i32
    return %arg0, %2, %c0_i32_0 : i32, i32, i32
  }
  func.func @transform_5(%arg0: i32, %arg1: i32) -> (i32, i32, i32) {
    %c4_i32 = arith.constant 4 : i32
    %0 = arith.muli %arg1, %c4_i32 : i32
    %c4_i32_0 = arith.constant 4 : i32
    %1 = arith.addi %0, %c4_i32_0 : i32
    %c7_i32 = arith.constant 7 : i32
    %2 = arith.minsi %1, %c7_i32 : i32
    %c0_i32 = arith.constant 0 : i32
    %c0_i32_1 = arith.constant 0 : i32
    return %arg0, %2, %c0_i32 : i32, i32, i32
  }
  func.func @transform_6(%arg0: i32, %arg1: i32) -> (i32, i32, i32) {
    %c0_i32 = arith.constant 0 : i32
    %c0_i32_0 = arith.constant 0 : i32
    return %arg0, %arg1, %c0_i32 : i32, i32, i32
  }
  func.func @transform_7(%arg0: i32, %arg1: i32) -> (i32, i32, i32) {
    %c4_i32 = arith.constant 4 : i32
    %0 = arith.muli %arg1, %c4_i32 : i32
    %c1_i32 = arith.constant 1 : i32
    %1 = arith.subi %0, %c1_i32 : i32
    %c0_i32 = arith.constant 0 : i32
    %2 = arith.maxsi %1, %c0_i32 : i32
    %c0_i32_0 = arith.constant 0 : i32
    %c0_i32_1 = arith.constant 0 : i32
    return %arg0, %2, %c0_i32_0 : i32, i32, i32
  }
  func.func @transform_8(%arg0: i32, %arg1: i32) -> (i32, i32, i32) {
    %c4_i32 = arith.constant 4 : i32
    %0 = arith.muli %arg1, %c4_i32 : i32
    %c4_i32_0 = arith.constant 4 : i32
    %1 = arith.addi %0, %c4_i32_0 : i32
    %c7_i32 = arith.constant 7 : i32
    %2 = arith.minsi %1, %c7_i32 : i32
    %c0_i32 = arith.constant 0 : i32
    %c0_i32_1 = arith.constant 0 : i32
    return %arg0, %2, %c0_i32 : i32, i32, i32
  }
  func.func @transform_9(%arg0: i32, %arg1: i32) -> (i32, i32) {
    %c0_i32 = arith.constant 0 : i32
    %c0_i32_0 = arith.constant 0 : i32
    %c0_i32_1 = arith.constant 0 : i32
    return %c0_i32, %c0_i32_0 : i32, i32
  }
  func.func @transform_10(%arg0: i32, %arg1: i32) -> (i32, i32) {
    %c0_i32 = arith.constant 0 : i32
    %c0_i32_0 = arith.constant 0 : i32
    %c0_i32_1 = arith.constant 0 : i32
    return %c0_i32, %c0_i32_0 : i32, i32
  }
  func.func @transform_11(%arg0: i32, %arg1: i32) -> (i32, i32) {
    %c0_i32 = arith.constant 0 : i32
    %c0_i32_0 = arith.constant 0 : i32
    %c0_i32_1 = arith.constant 0 : i32
    return %c0_i32, %c0_i32_0 : i32, i32
  }
  func.func @transform_12(%arg0: i32, %arg1: i32) -> (i32, i32) {
    %c0_i32 = arith.constant 0 : i32
    %c0_i32_0 = arith.constant 0 : i32
    %c0_i32_1 = arith.constant 0 : i32
    return %c0_i32, %c0_i32_0 : i32, i32
  }
  func.func @transform_13(%arg0: i32, %arg1: i32) -> (i32, i32, i32, i32) {
    %c0_i32 = arith.constant 0 : i32
    %c0_i32_0 = arith.constant 0 : i32
    %c0_i32_1 = arith.constant 0 : i32
    return %arg0, %arg1, %c0_i32, %c0_i32_0 : i32, i32, i32, i32
  }
}

</mosaic_0001>

<bundles_post_ra>
// kernel: tpu_custom_call.1
= control target key start
LH: loop header
LB: loop body
LE: loop exit
PB: predicated region body
PF: predicated region fallthrough
CT: control target
= control target key end

     0   :  { %s3769_s0 = inlined_call_operand.vmem [shape: bf16[2,64,128], index: 0, kind: input, shape index: {}]   ;;  %s3770_s1 = inlined_call_operand.vmem [shape: bf16[2,64,128], index: 1, kind: input, shape index: {}]   ;;  %s3771_s2 = inlined_call_operand.hbm [shape: bf16[2,64,128], index: 2, kind: input, shape index: {}]   ;;  %s3772_s3 = inlined_call_operand.hbm [shape: bf16[2,64,128], index: 3, kind: input, shape index: {}]   ;;  %s3773_s4 = inlined_call_operand.hbm [shape: bf16[2,64,128], index: 4, kind: input, shape index: {}]   ;;  %s3774_s5 = inlined_call_operand.hbm [shape: bf16[2,64,128], index: 5, kind: input, shape index: {}]   ;;  %s3775_s6 = inlined_call_operand.hbm [shape: bf16[2,64,128], index: 6, kind: input, shape index: {}]   ;;  %s3776_s7 = inlined_call_operand.hbm [shape: bf16[2,64,128], index: 7, kind: input, shape index: {}]   ;;  %s3777_s8 = inlined_call_operand.hbm [shape: bf16[2,64,128], index: 8, kind: input, shape index: {}]   ;;  %s3778_s9 = inlined_call_operand.vmem [shape: f32[9,128], index: 9, kind: input, shape index: {}]   ;;  %s3779_s10 = inlined_call_operand.vmem [shape: bf16[128,8], index: 10, kind: input, shape index: {}]   ;;  %s3780_s11 = inlined_call_operand.vmem [shape: f32[9,128], index: 11, kind: input, shape index: {}]   ;;  %s3781_s12 = inlined_call_operand.vmem [shape: bf16[128,8], index: 12, kind: input, shape index: {}]   ;;  %s3782_s13 = inlined_call_operand.hbm [shape: f32[2,2,2,8], index: 13, kind: output, shape index: {}]  }
   0x1   :  { %3841 = sst [smem:[#allocation43_spill]] %s3769_s0 }
   0x2   :  { %3842 = sst [smem:[#allocation44_spill]] %s3770_s1 }
   0x3   :  { %3843 = sst [smem:[#allocation45_spill]] %s3771_s2 }
   0x4   :  { %3844 = sst [smem:[#allocation46_spill]] %s3772_s3 }
   0x5   :  { %3845 = sst [smem:[#allocation47_spill]] %s3773_s4 }
   0x6   :  { %3846 = sst [smem:[#allocation48_spill]] %s3774_s5 }
   0x7   :  { %3847 = sst [smem:[#allocation49_spill]] %s3776_s7 }
   0x8   :  { %3848 = sst [smem:[#allocation50_spill]] %s3777_s8 }
   0x9   :  { %3849 = sst [smem:[#allocation51_spill]] %s3778_s9 }
   0xa   :  { %3850 = sst [smem:[#allocation52_spill]] %s3779_s10 }
   0xb   :  { %3851 = sst [smem:[#allocation53_spill]] %s3780_s11 }
   0xc   :  { %3852 = sst [smem:[#allocation54_spill]] %s3781_s12 }
   0xd   :  { %3853 = sst [smem:[#allocation55_spill]] %s3782_s13 }
   0xe   :  { %18 = vsyncpa [#allocation3], 0 }
   0xf   :  { %20 = vsyncpa [#allocation3 + $0x1], 0 }
  0x10   :  { %21 = vsyncpa [#allocation6], 0 }
  0x11   :  { %23 = vsyncpa [#allocation6 + $0x1], 0 }
  0x12   :  { %24 = vsyncpa [#allocation9], 0 }
  0x13   :  { %26 = vsyncpa [#allocation9 + $0x1], 0 }
  0x14   :  { %27 = vsyncpa [#allocation12], 0 }
  0x15   :  { %29 = vsyncpa [#allocation12 + $0x1], 0 }
  0x16   :  { %30 = vsyncpa [#allocation4], 0 }
  0x17   :  { %32 = vsyncpa [#allocation4 + $0x1], 0  ;;  %s2632_s25 = smov 0   ;;  %s2634_s26 = smov 0  }
  0x18   :  { %s2636_s27 = smov 0   ;;  %s2638_s28 = smov 0  }
  0x19   :  { %s2640_s29 = smov 0   ;;  %s2642_s30 = smov 0  }
  0x1a   :  { %s2644_s14 = smov 0   ;;  %s2646_s15 = smov 0  }
  0x1b   :  { %s2648_s16 = smov 0   ;;  %s2650_s17 = smov 0  }
  0x1c   :  { %s2652_s18 = smov 0   ;;  %s2654_s19 = smov 0  }
  0x1d   :  { %s2656_s20 = smov 0   ;;  %s2658_s21 = smov 0  }
  0x1e LB: > { %3854 = sst [smem:[#allocation23_spill]] %s2497_s25  ;;  %s2703_s22 = sadd.s32 4294967295, %s2549_s21   ;;  %s2549_s21 = sphi %s2658_s21, %s38_s21   ;;  %s2545_s20 = sphi %s2656_s20, %s3981_s20   ;;  %s2541_s19 = sphi %s2654_s19, %s3980_s19   ;;  %s2537_s18 = sphi %s2652_s18, %s3989_s18   ;;  %s2533_s17 = sphi %s2650_s17, %s3988_s17   ;;  %s2529_s16 = sphi %s2648_s16, %s3987_s16   ;;  %s2525_s15 = sphi %s2646_s15, %s3986_s15   ;;  %s2521_s14 = sphi %s2644_s14, %s3976_s14   ;;  %s2517_s30 = sphi %s2642_s30, %s3975_s30   ;;  %s2513_s29 = sphi %s2640_s29, %s3985_s29   ;;  %s2509_s28 = sphi %s2638_s28, %s3984_s28   ;;  %s2505_s27 = sphi %s2636_s27, %s3973_s27   ;;  %s2501_s26 = sphi %s2634_s26, %s3983_s26   ;;  %s2497_s25 = sphi %s2632_s25, %s3971_s25  }
  0x1f   : > { %3855 = sst [smem:[#allocation24_spill]] %s2501_s26  ;;  %s1802_s23 = sadd.s32 4294967294, %s2549_s21  }
  0x20   : > { %3856 = sst [smem:[#allocation25_spill]] %s2505_s27  ;;  %s3786_s24 = sadd.s32 1, %s2541_s19 }
  0x21   : > { %3857 = sst [smem:[#allocation26_spill]] %s2509_s28  ;;  %s2708_s13 = sshll.u32 %s2541_s19, 2 }
  0x22   : > { %3858 = sst [smem:[#allocation27_spill]] %s2517_s30  ;;  %p2712_p0 = scmp.ge.s32.totalorder %s3786_s24, 2 }
  0x23   : > { %3859 = sst [smem:[#allocation28_spill]] %s2525_s15  ;;  %p3800_p1 = scmp.eq.s32.totalorder %s2549_s21, 0 }
  0x24   : > { %3860 = sst [smem:[#allocation29_spill]] %s2533_s17  ;;  %p166_p2 = scmp.ne.s32.totalorder %s2517_s30, %s2513_s29 }
  0x25   : > { %3861 = sst [smem:[#allocation30_spill]] %s2537_s18  ;;  %p3799_p3 = scmp.ne.s32.totalorder %s2513_s29, %s2509_s28 }
  0x26   : > { %3862 = sst [smem:[#allocation31_spill]] %s2541_s19  ;;  %p454_p4 = scmp.eq.s32.totalorder %s2703_s22, 3 }
  0x27   : > { %3863 = sst [smem:[#allocation32_spill]] %s2545_s20  ;;  %p2725_p5 = por %p166_p2, %p3800_p1 }
  0x28   : > { %p460_p6 = scmp.eq.s32.totalorder %s1802_s23, 3  ;;  %p2729_p7 = por %p454_p4, %p166_p2 }
  0x29   : > { %p3798_p9 = scmp.lt.s32.totalorder %s2549_s21, 4  ;;  %s2742_s9 = sshll.u32 %s2545_s20, 3 }
  0x2a   : > { %s3866_s1 = scalar_select %p2729_p7, 1, 0 }
  0x2b   : > { %p2736_p8 = por %p460_p6, %p3799_p3  ;;  %s2745_s12 = sand.u32 1, %s2549_s21  }
  0x2c   : > { %3867 = sst [smem:[#allocation33_spill]] %s3866_s1  ;;  %s550_s10 = sand.u32 1, %s2517_s30  }
  0x2d   : > { %s3868_s24 = scalar_select %p2736_p8, 1, 0 }
  0x2e   : > { %s2748_s18 = sshll.u32 %s550_s10, 4  ;;  %s558_s23 = sadd.s32 %s2742_s9, %s2708_s13 }
  0x2f   : > { %3869 = sst [smem:[#allocation34_spill]] %s3868_s24  ;;  %s2752_s17 = sshll.u32 %s558_s23, 6 }
  0x30   : > { %s3870_s3 = sld [smem:[#allocation46_spill]]  ;;  %s552_s24 = scalar_lea.vmem [#allocation5], %s2748_s18 }
  0x31   : > { %s561_s7 = sshll.u32 %s552_s24, 4  ;;  %p2767_p10 = pnand %p3798_p9, %p2725_p5  ;;  %s2761_s7 = int_to_ptr.vmem [resolvable:$true] %s561_s7 }
  0x33   : > { %s3871_s10 = scalar_select %p2767_p10, 1, 0 }
  0x34   : > { %p3815_p12 = pneg %p2767_p10 }
  0x35   : > { %3872 = sst [smem:[#allocation35_spill]] %s3871_s10 }
  0x36   : > { %s2758_s2 = scalar_lea.hbm %s3870_s3, %s2752_s17  ;;  %s2174_s0 = scalar_lea.hbm %s3870_s3, 1024 }
  0x37   : > { %s2169_s1 = scalar_lea.hbm %s2758_s2, 256  ;;  %p2175_p4 = scmp.lt.u32.totalorder %s2758_s2, %s3870_s3 }
  0x38   : > { %p2170_p11 = scmp.ne.s32.totalorder %s2758_s2, %s2169_s1  ;;  %p2176_p5 = scmp.lt.u32.totalorder %s2174_s0, %s2169_s1 }
  0x39   : > { %p2178_p9 = scmp.lt.u32.totalorder %s2169_s1, %s2758_s2 }
  0x3a   : > { %p2172_p13 = pnand %p3815_p12, %p2170_p11  ;;  %p2177_p6 = por %p2176_p5, %p2175_p4 }
  0x3c   : > { %p2173_p2 = pneg %p2172_p13  ;;  %p2179_p3 = por %p2178_p9, %p2177_p6 }
  0x3e   : > { %p2180_p1 = pnand %p2179_p3, %p2173_p2 }
  0x40   : > { %2183 = shalt.err (!%p2180_p1)
}
  0x41   : > { %s2184_s23 = scalar_lea.vmem %s2761_s7, 256  ;;  %s2551_s8 = smov [#allocation5]  }
  0x42   : > { %p2185_p11 = scmp.ne.s32.totalorder %s2761_s7, %s2184_s23  ;;  %s2189_s24 = sshll.u32 %s2551_s8, 4  ;;  %s2190_s24 = int_to_ptr.vmem [resolvable:$false] %s2189_s24 }
  0x43   : > { %s2191_s4 = scalar_lea.vmem %s2190_s24, 512  ;;  %p2192_p7 = scmp.lt.s32.totalorder %s2761_s7, %s2190_s24 }
  0x44   : > { %p2187_p13 = pnand %p2185_p11, %p3815_p12  ;;  %p2193_p4 = scmp.lt.s32.totalorder %s2191_s4, %s2184_s23 }
  0x46   : > { %p2188_p8 = pneg %p2187_p13  ;;  %p2194_p5 = por %p2193_p4, %p2192_p7 }
  0x48   : > { %p2195_p9 = pnand %p2194_p5, %p2188_p8 }
  0x4a   : > { %2198 = shalt.err (!%p2195_p9)
}
  0x4b   : > { %s3804_s25 = smov 64   ;;  %s3805_s1 = smov 4  }
  0x4c   : > { %s3873_s23 = scalar_lea.sflag [#allocation6], %s2745_s12  ;;  %s2806_s24 = scalar_lea.hbm %s3775_s6, %s2752_s17 }
  0x4d   : > { %2016 = dma.hbm_to_vmem [thread:$0]  (!%p2767_p10), %s2758_s2, 256, %s2761_s7, %s3873_s23, %s3804_s25, %s3804_s25, %s3805_s1  }
  0x4e   : > { %s623_s4 = scalar_lea.vmem [#allocation10], %s2748_s18  ;;  %p1853_p1 = scmp.ge.s32.totalorder %s2549_s21, 1 }
  0x4f   : > { %s632_s3 = sshll.u32 %s623_s4, 4  ;;  %p688_p3 = scmp.lt.s32.totalorder %s2549_s21, 5  ;;  %s2809_s3 = int_to_ptr.vmem [resolvable:$true] %s632_s3 }
  0x50   : > { %s3875_s2 = sadd.s32 1, %s2541_s19  ;;  %s50_s7 = sadd.s32 1, %s2545_s20 }
  0x51   : > { %p2813_p7 = pnand %p1853_p1, %p688_p3  ;;  %s3991_s2 = smov (%p2712_p0, %s3875_s2), 0 }
  0x52   : > { %3876 = sst [smem:[#allocation36_spill]] %s3991_s2  ;;  %s119_s17 = sadd.s32 4, %s2708_s13 }
  0x53   : > { %s3874_s10 = scalar_select %p2813_p7, 1, 0 }
  0x54   : > { %s3993_s7 = smov (!%p2712_p0, %s50_s7), %s2545_s20  ;;  %p120_p8 = scmp.lt.s32.totalorder %s119_s17, 7 }
  0x55   : > { %s3806_s18 = sshll.u32 %s3991_s2, 2  ;;  %p52_p2 = scmp.ge.s32.totalorder %s3993_s7, 2 }
  0x56   : > { %s123_s23 = sadd.s32 4, %s3806_s18  ;;  %s3995_s17 = smov (!%p120_p8, %s119_s17), 7 }
  0x57   : > { %s3997_s7 = smov (%p52_p2, %s3993_s7), 0  ;;  %p124_p6 = scmp.lt.s32.totalorder %s123_s23, 7 }
  0x58   : > { %3877 = sst [smem:[#allocation37_spill]] %s3997_s7  ;;  %s131_s11 = sadd.s32 1, %s2529_s16 }
  0x59   : > { %s2836_s0 = ssub.s32 %s2545_s20, %s3997_s7  ;;  %p138_p0 = scmp.ne.s32.totalorder %s2529_s16, %s2525_s15 }
  0x5a   : > { %s3999_s23 = smov (!%p124_p6, %s123_s23), 7  ;;  %p3878_p11 = scmp.eq.s32.totalorder %s2549_s21, 0 }
  0x5b   : > { %p144_p4 = scmp.ne.s32.totalorder %s2525_s15, %s2521_s14  ;;  %s127_s4 = ssub.s32 %s3995_s17, %s3999_s23 }
  0x5c   : > { %p2842_p13 = por %p3878_p11, %p138_p0  ;;  %p3816_p5 = scmp.eq.s32.totalorder %s2703_s22, 0 }
  0x5d   : > { %s128_s25 = sor.u32 %s127_s4, %s2836_s0  ;;  %s155_s1 = ssub.s32 %s2541_s19, %s3991_s2 }
  0x5e   : > { %p129_p9 = scmp.eq.s32.totalorder %s128_s25, 0  ;;  %p2854_p1 = por %p3816_p5, %p144_p4 }
  0x5f   : > { %s156_s7 = sor.u32 %s155_s1, %s2836_s0  ;;  %p3882_p3 = scmp.ne.s32.totalorder %s2513_s29, %s2509_s28 }
  0x60   : > { %s3880_s18 = scalar_select %p2854_p1, 1, 0 }
  0x61   : > { %p2864_p8 = por %p3882_p3, %p3816_p5  ;;  %p157_p2 = scmp.eq.s32.totalorder %s156_s7, 0 }
  0x62   : > { %3881 = sst [smem:[#allocation38_spill]] %s3880_s18  ;;  %s3813_s23 = sand.u32 1, %s2529_s16  }
  0x63   : > { %s3883_s20 = scalar_select %p2864_p8, 1, 0 }
  0x64   : > { %s2869_s14 = scalar_select %p129_p9, %s2529_s16, %s131_s11  }
  0x65   : > { %3884 = sst [smem:[#allocation39_spill]] %s3883_s20  ;;  %s2874_s4 = sshll.u32 %s3813_s23, 2 }
  0x66   : > { %3885 = sst [smem:[#allocation40_spill]] %s2869_s14  ;;  %s537_s25 = sadd.s32 %s2742_s9, %s3995_s17 }
  0x67   : > { %s3886_s19 = sadd.s32 1, %s2517_s30  ;;  %s2882_s18 = sshll.u32 %s537_s25, 6 }
  0x68   : > { %s2880_s15 = scalar_select %p157_p2, %s2517_s30, %s3886_s19  }
  0x69   : > { %p3888_p6 = scmp.lt.s32.totalorder %s2549_s21, 4  ;;  %s3890_s5 = sld [smem:[#allocation48_spill]] }
  0x6a   : > { %3887 = sst [smem:[#allocation41_spill]] %s2880_s15  ;;  %s599_s19 = scalar_lea.vmem [#allocation8], %s2874_s4 }
  0x6b   : > { %p2888_p0 = pnand %p3888_p6, %p2842_p13  ;;  %s612_s17 = sshll.u32 %s599_s19, 4  ;;  %s2899_s17 = int_to_ptr.vmem [resolvable:$true] %s612_s17 }
  0x6d   : > { %s3889_s1 = scalar_select %p2888_p0, 1, 0 }
  0x6e   : > { %p2906_p13 = pneg %p2888_p0 }
  0x6f   : > { %s2896_s23 = scalar_lea.hbm %s3890_s5, %s2882_s18  ;;  %s2204_s15 = scalar_lea.hbm %s3890_s5, 1024 }
  0x70   : > { %s2199_s25 = scalar_lea.hbm %s2896_s23, 64  ;;  %p2205_p3 = scmp.lt.u32.totalorder %s2896_s23, %s3890_s5 }
  0x71   : > { %p2200_p11 = scmp.ne.s32.totalorder %s2896_s23, %s2199_s25  ;;  %p2206_p2 = scmp.lt.u32.totalorder %s2204_s15, %s2199_s25 }
  0x72   : > { %p2208_p12 = scmp.lt.u32.totalorder %s2199_s25, %s2896_s23 }
  0x73   : > { %p2202_p4 = pnand %p2906_p13, %p2200_p11  ;;  %p2207_p6 = por %p2206_p2, %p2205_p3 }
  0x75   : > { %p2203_p9 = pneg %p2202_p4  ;;  %p2209_p5 = por %p2208_p12, %p2207_p6 }
  0x77   : > { %p2210_p8 = pnand %p2209_p5, %p2203_p9 }
  0x79   : > { %2213 = shalt.err (!%p2210_p8)
}
  0x7a   : > { %s2214_s8 = scalar_lea.vmem %s2899_s17, 64  ;;  %s2554_s11 = smov [#allocation8]  }
  0x7b   : > { %p2215_p11 = scmp.ne.s32.totalorder %s2899_s17, %s2214_s8  ;;  %s2219_s7 = sshll.u32 %s2554_s11, 4  ;;  %s2220_s7 = int_to_ptr.vmem [resolvable:$false] %s2219_s7 }
  0x7c   : > { %s2221_s30 = scalar_lea.vmem %s2220_s7, 128  ;;  %p2222_p7 = scmp.lt.s32.totalorder %s2899_s17, %s2220_s7 }
  0x7d   : > { %p2217_p4 = pnand %p2215_p11, %p2906_p13  ;;  %p2223_p10 = scmp.lt.s32.totalorder %s2221_s30, %s2214_s8 }
  0x7f   : > { %p2218_p1 = pneg %p2217_p4  ;;  %p2224_p3 = por %p2223_p10, %p2222_p7 }
  0x81   : > { %p2225_p2 = pnand %p2224_p3, %p2218_p1 }
  0x83   : > { %2228 = shalt.err (!%p2225_p2)
}
  0x84   : > { %s3892_s15 = scalar_lea.sflag [#allocation9], %s2745_s12  ;;  %s3893_s25 = sld [smem:[#allocation23_spill]] }
  0x85   : > { %2022 = dma.hbm_to_vmem [thread:$0]  (!%p2888_p0), %s2896_s23, 64, %s2899_s17, %s3892_s15  }
  0x86   : > { %s1810_s8 = sadd.s32 4294967295, %s2708_s13  ;;  %s3894_s19 = sshll.u32 %s3991_s2, 2 }
  0x87   : > { %s1812_s11 = sadd.s32 4294967295, %s3894_s19  ;;  %p184_p10 = scmp.gt.s32.totalorder %s1810_s8, 0 }
  0x88   : > { %p188_p12 = scmp.gt.s32.totalorder %s1812_s11, 0  ;;  %s195_s7 = sadd.s32 1, %s2505_s27 }
  0x89   : > { %p202_p7 = scmp.ne.s32.totalorder %s2505_s27, %s2501_s26  ;;  %s4001_s8 = smov (!%p184_p10, %s1810_s8), 0 }
  0x8a   : > { %s4003_s11 = smov (!%p188_p12, %s1812_s11), 0  ;;  %p3895_p5 = scmp.eq.s32.totalorder %s2549_s21, 0 }
  0x8b   : > { %p208_p8 = scmp.ne.s32.totalorder %s2501_s26, %s3893_s25  ;;  %s191_s30 = ssub.s32 %s4001_s8, %s4003_s11 }
  0x8c   : > { %p204_p1 = por %p202_p7, %p3895_p5  ;;  %s573_s5 = sand.u32 1, %s2505_s27  }
  0x8d   : > { %s192_s28 = sor.u32 %s191_s30, %s2836_s0  ;;  %p3896_p9 = scmp.eq.s32.totalorder %s2703_s22, 0 }
  0x8e   : > { %p193_p11 = scmp.eq.s32.totalorder %s192_s28, 0  ;;  %s2949_s23 = sshll.u32 %s573_s5, 2 }
  0x8f   : > { %p2945_p6 = por %p208_p8, %p3896_p9  ;;  %s584_s17 = sadd.s32 %s2742_s9, %s4001_s8 }
  0x90   : > { %s2953_s15 = scalar_select %p193_p11, %s2505_s27, %s195_s7  }
  0x91   : > { %s3897_s13 = scalar_select %p2945_p6, 1, 0 }
  0x92   : > { %3899 = sst [smem:[#allocation42_spill]] %s2953_s15  ;;  %s1835_s19 = sshll.u32 %s584_s17, 6 }
  0x93   : > { %3898 = sst [smem:[#allocation23_spill]] %s3897_s13  ;;  %p3900_p4 = scmp.lt.s32.totalorder %s2549_s21, 4 }
  0x94   : > { %s3902_s30 = sld [smem:[#allocation47_spill]]  ;;  %s3904_s13 = sld [smem:[#allocation49_spill]] }
  0x95   : > { %p2957_p3 = pnand %p3900_p4, %p204_p1  ;;  %s646_s9 = scalar_lea.vmem [#allocation11], %s2949_s23 }
  0x96   : > { %s659_s8 = sshll.u32 %s646_s9, 4  ;;  %s3833_s7 = scalar_lea.sflag [#allocation12], %s2745_s12  ;;  %s2972_s8 = int_to_ptr.vmem [resolvable:$true] %s659_s8 }
  0x97   : > { %p3834_p10 = pneg %p2957_p3 }
  0x9a   : > { %s3903_s2 = smov %s3902_s30  ;;  %s2964_s26 = scalar_lea.hbm %s3902_s30, %s1835_s19 }
  0x9b   : > { %s2969_s20 = scalar_lea.hbm %s3904_s13, %s1835_s19  ;;  %s2234_s0 = scalar_lea.hbm %s3904_s13, 1024 }
  0x9c   : > { %s2229_s17 = scalar_lea.hbm %s2969_s20, 64  ;;  %p2235_p5 = scmp.lt.u32.totalorder %s2969_s20, %s3904_s13 }
  0x9d   : > { %p2230_p2 = scmp.ne.s32.totalorder %s2969_s20, %s2229_s17  ;;  %p2236_p1 = scmp.lt.u32.totalorder %s2234_s0, %s2229_s17 }
  0x9e   : > { %p2238_p9 = scmp.lt.u32.totalorder %s2229_s17, %s2969_s20 }
  0x9f   : > { %p2232_p12 = pnand %p3834_p10, %p2230_p2  ;;  %p2237_p8 = por %p2236_p1, %p2235_p5 }
  0xa1   : > { %p2233_p7 = pneg %p2232_p12  ;;  %p2239_p11 = por %p2238_p9, %p2237_p8 }
  0xa3   : > { %p2240_p4 = pnand %p2239_p11, %p2233_p7 }
  0xa5   : > { %2243 = shalt.err (!%p2240_p4)
}
  0xa6   : > { %s2244_s5 = scalar_lea.vmem %s2972_s8, 64  ;;  %s2555_s9 = smov [#allocation11]  }
  0xa7   : > { %p2245_p2 = scmp.ne.s32.totalorder %s2972_s8, %s2244_s5  ;;  %s2249_s11 = sshll.u32 %s2555_s9, 4  ;;  %s2250_s11 = int_to_ptr.vmem [resolvable:$false] %s2249_s11 }
  0xa8   : > { %s2251_s19 = scalar_lea.vmem %s2250_s11, 128  ;;  %p2252_p0 = scmp.lt.s32.totalorder %s2972_s8, %s2250_s11 }
  0xa9   : > { %p2247_p12 = pnand %p2245_p2, %p3834_p10  ;;  %p2253_p5 = scmp.lt.s32.totalorder %s2251_s19, %s2244_s5 }
  0xab   : > { %p2248_p6 = pneg %p2247_p12  ;;  %p2254_p1 = por %p2253_p5, %p2252_p0 }
  0xad   : > { %p2255_p8 = pnand %p2254_p1, %p2248_p6 }
  0xaf   : > { %2258 = shalt.err (!%p2255_p8)
}
  0xb0   : > { %2028 = dma.hbm_to_vmem [thread:$0]  (!%p2957_p3), %s2969_s20, 64, %s2972_s8, %s3833_s7  }
  0xb1   : > { %s3905_s30 = sld [smem:[#allocation45_spill]]  ;;  %s528_s5 = scalar_lea.vmem [#allocation2], %s2874_s4 }
  0xb2   : > { %s541_s11 = sshll.u32 %s528_s5, 4  ;;  %s575_s19 = scalar_lea.vmem [#allocation7], %s2949_s23  ;;  %s3010_s11 = int_to_ptr.vmem [resolvable:$true] %s541_s11 }
  0xb3   : > { %s588_s13 = sshll.u32 %s575_s19, 4  ;;  %s3907_s15 = sand.u32 1, %s2529_s16   ;;  %s3012_s13 = int_to_ptr.vmem [resolvable:$true] %s588_s13 }
  0xb4   : > { %s525_s27 = scalar_lea.sflag [#allocation3], %s3907_s15 }
  0xb7   : > { %s3906_s9 = smov %s3905_s30  ;;  %s3006_s28 = scalar_lea.hbm %s3905_s30, %s2882_s18 }
  0xb8   : > { %s2259_s20 = scalar_lea.hbm %s3006_s28, 64  ;;  %s2264_s0 = scalar_lea.hbm %s3906_s9, 1024 }
  0xb9   : > { %p2260_p0 = scmp.ne.s32.totalorder %s3006_s28, %s2259_s20  ;;  %p2265_p9 = scmp.lt.u32.totalorder %s3006_s28, %s3906_s9 }
  0xba   : > { %p2266_p11 = scmp.lt.u32.totalorder %s2264_s0, %s2259_s20  ;;  %p2268_p2 = scmp.lt.u32.totalorder %s2259_s20, %s3006_s28 }
  0xbb   : > { %p2262_p6 = pnand %p2260_p0, %p2906_p13 }
  0xbc   : > { %p2267_p4 = por %p2266_p11, %p2265_p9 }
  0xbd   : > { %p2263_p7 = pneg %p2262_p6 }
  0xbe   : > { %p2269_p12 = por %p2268_p2, %p2267_p4 }
  0xc0   : > { %p2270_p5 = pnand %p2269_p12, %p2263_p7 }
  0xc2   : > { %2273 = shalt.err (!%p2270_p5)
}
  0xc3   : > { %s2274_s23 = scalar_lea.vmem %s3010_s11, 64  ;;  %s2556_s15 = smov [#allocation2]  }
  0xc4   : > { %p2275_p1 = scmp.ne.s32.totalorder %s3010_s11, %s2274_s23  ;;  %s2279_s5 = sshll.u32 %s2556_s15, 4  ;;  %s2280_s5 = int_to_ptr.vmem [resolvable:$false] %s2279_s5 }
  0xc5   : > { %s2281_s7 = scalar_lea.vmem %s2280_s5, 128  ;;  %p2282_p6 = scmp.lt.s32.totalorder %s3010_s11, %s2280_s5 }
  0xc6   : > { %p2277_p8 = pnand %p2275_p1, %p2906_p13  ;;  %p2283_p10 = scmp.lt.s32.totalorder %s2281_s7, %s2274_s23 }
  0xc8   : > { %p2278_p0 = pneg %p2277_p8  ;;  %p2284_p9 = por %p2283_p10, %p2282_p6 }
  0xca   : > { %p2285_p11 = pnand %p2284_p9, %p2278_p0 }
  0xcc   : > { %2288 = shalt.err (!%p2285_p11)
}
  0xcd   : > { %p3908_p7 = scmp.ne.s32.totalorder %s3889_s1, 0  ;;  %s2289_s19 = scalar_lea.hbm %s2964_s26, 64 }
  0xce   : > { %p2290_p4 = scmp.ne.s32.totalorder %s2964_s26, %s2289_s19  ;;  %p3909_p2 = pneg %p2957_p3 }
  0xcf   : > { %2013 = dma.hbm_to_vmem [thread:$0]  (!%p3908_p7), %s3006_s28, 64, %s3010_s11, %s525_s27  }
  0xd0   : > { %p2292_p12 = pnand %p2290_p4, %p3909_p2  ;;  %s2294_s17 = scalar_lea.hbm %s3903_s2, 1024 }
  0xd1   : > { %p2295_p10 = scmp.lt.u32.totalorder %s2964_s26, %s3903_s2  ;;  %p2296_p1 = scmp.lt.u32.totalorder %s2294_s17, %s2289_s19 }
  0xd2   : > { %p2293_p5 = pneg %p2292_p12  ;;  %p2298_p0 = scmp.lt.u32.totalorder %s2289_s19, %s2964_s26 }
  0xd3   : > { %p2297_p8 = por %p2296_p1, %p2295_p10 }
  0xd5   : > { %p2299_p6 = por %p2298_p0, %p2297_p8 }
  0xd7   : > { %p2300_p9 = pnand %p2299_p6, %p2293_p5 }
  0xd9   : > { %2303 = shalt.err (!%p2300_p9)
}
  0xda   : > { %s2304_s27 = scalar_lea.vmem %s3012_s13, 64  ;;  %p3910_p4 = pmov %p3909_p2 }
  0xdb   : > { %p2305_p11 = scmp.ne.s32.totalorder %s3012_s13, %s2304_s27  ;;  %s2557_s28 = smov [#allocation7]  }
  0xdc   : > { %s2309_s11 = sshll.u32 %s2557_s28, 4  ;;  %s2310_s11 = int_to_ptr.vmem [resolvable:$false] %s2309_s11 }
  0xdd   : > { %p2307_p2 = pnand %p2305_p11, %p3910_p4  ;;  %s2311_s23 = scalar_lea.vmem %s2310_s11, 128 }
  0xde   : > { %p2312_p7 = scmp.lt.s32.totalorder %s3012_s13, %s2310_s11  ;;  %p2313_p10 = scmp.lt.s32.totalorder %s2311_s23, %s2304_s27 }
  0xdf   : > { %p2308_p12 = pneg %p2307_p2 }
  0xe0   : > { %p2314_p1 = por %p2313_p10, %p2312_p7 }
  0xe2   : > { %p2315_p8 = pnand %p2314_p1, %p2308_p12 }
  0xe4   : > { %2318 = shalt.err (!%p2315_p8)
}
  0xe5   : > { %s3911_s15 = scalar_lea.sflag [#allocation6], %s2745_s12  ;;  %s3912_s5 = sld [smem:[#allocation35_spill]] }
  0xe6   : > { %2019 = dma.hbm_to_vmem [thread:$0]  (!%p2957_p3), %s2964_s26, 64, %s3012_s13, %s3911_s15  }
  0xe7   : > { %s2319_s7 = scalar_lea.hbm %s2806_s24, 256  ;;  %s2324_s25 = scalar_lea.hbm %s3775_s6, 1024 }
  0xe8   : > { %p2320_p5 = scmp.ne.s32.totalorder %s2806_s24, %s2319_s7  ;;  %p2325_p11 = scmp.lt.u32.totalorder %s2806_s24, %s3775_s6 }
  0xe9   : > { %p2326_p4 = scmp.lt.u32.totalorder %s2324_s25, %s2319_s7  ;;  %p2328_p12 = scmp.lt.u32.totalorder %s2319_s7, %s2806_s24 }
  0xeb   : > { %p3913_p0 = scmp.ne.s32.totalorder %s3912_s5, 0  ;;  %p2327_p2 = por %p2326_p4, %p2325_p11 }
  0xed   : > { %p3914_p6 = pneg %p3913_p0  ;;  %p2329_p10 = por %p2328_p12, %p2327_p2 }
  0xef   : > { %p2322_p9 = pnand %p2320_p5, %p3914_p6 }
  0xf1   : > { %p2323_p7 = pneg %p2322_p9 }
  0xf3   : > { %p2330_p1 = pnand %p2329_p10, %p2323_p7 }
  0xf5   : > { %2333 = shalt.err (!%p2330_p1)
}
  0xf6   : > { %s2334_s26 = scalar_lea.vmem %s2809_s3, 256  ;;  %p3915_p8 = pmov %p3914_p6 }
  0xf7   : > { %p2335_p3 = scmp.ne.s32.totalorder %s2809_s3, %s2334_s26  ;;  %s2558_s13 = smov [#allocation10]  }
  0xf8   : > { %s2339_s0 = sshll.u32 %s2558_s13, 4  ;;  %s2340_s0 = int_to_ptr.vmem [resolvable:$false] %s2339_s0 }
  0xf9   : > { %p2337_p5 = pnand %p2335_p3, %p3915_p8  ;;  %s2341_s30 = scalar_lea.vmem %s2340_s0, 512 }
  0xfa   : > { %p2342_p9 = scmp.lt.s32.totalorder %s2809_s3, %s2340_s0  ;;  %p2343_p11 = scmp.lt.s32.totalorder %s2341_s30, %s2334_s26 }
  0xfb   : > { %p2338_p6 = pneg %p2337_p5 }
  0xfc   : > { %p2344_p4 = por %p2343_p11, %p2342_p9 }
  0xfe   : > { %p2345_p2 = pnand %p2344_p4, %p2338_p6 }
 0x100   : > { %2348 = shalt.err (!%p2345_p2)
}
 0x101   : > { %s3916_s27 = smov 4   ;;  %s3917_s28 = smov 64  }
 0x102   : > { %s3918_s11 = scalar_lea.sflag [#allocation9], %s2745_s12  ;;  %s3919_s7 = sld [smem:[#allocation50_spill]] }
 0x103   : > { %2025 = dma.hbm_to_vmem [thread:$0]  (!%p3913_p0), %s2806_s24, 256, %s2809_s3, %s3918_s11, %s3917_s28, %s3917_s28, %s3916_s27  }
 0x104   : > { %s670_s5 = scalar_lea.vmem [#allocation13], %s2874_s4 }
 0x105   : > { %s683_s20 = sshll.u32 %s670_s5, 4  ;;  %s684_s20 = int_to_ptr.vmem [resolvable:$true] %s683_s20 }
 0x108   : > { %s3094_s19 = scalar_lea.hbm %s3919_s7, %s2882_s18  ;;  %s2354_s3 = scalar_lea.hbm %s3919_s7, 1024 }
 0x109   : > { %s2349_s25 = scalar_lea.hbm %s3094_s19, 64  ;;  %p2355_p0 = scmp.lt.u32.totalorder %s3094_s19, %s3919_s7 }
 0x10a   : > { %p2350_p7 = scmp.ne.s32.totalorder %s3094_s19, %s2349_s25  ;;  %p2356_p1 = scmp.lt.u32.totalorder %s2354_s3, %s2349_s25 }
 0x10b   : > { %p2358_p8 = scmp.lt.u32.totalorder %s2349_s25, %s3094_s19 }
 0x10c   : > { %p2352_p12 = pnand %p2350_p7, %p2906_p13  ;;  %p2357_p3 = por %p2356_p1, %p2355_p0 }
 0x10e   : > { %p2353_p10 = pneg %p2352_p12  ;;  %p2359_p5 = por %p2358_p8, %p2357_p3 }
 0x110   : > { %p2360_p6 = pnand %p2359_p5, %p2353_p10 }
 0x112   : > { %2363 = shalt.err (!%p2360_p6)
}
 0x113   : > { %s2364_s18 = scalar_lea.vmem %s684_s20, 64  ;;  %s2559_s4 = smov [#allocation13]  }
 0x114   : > { %p2365_p9 = scmp.ne.s32.totalorder %s684_s20, %s2364_s18  ;;  %s2369_s13 = sshll.u32 %s2559_s4, 4  ;;  %s2370_s13 = int_to_ptr.vmem [resolvable:$false] %s2369_s13 }
 0x115   : > { %s2371_s0 = scalar_lea.vmem %s2370_s13, 128  ;;  %p2372_p2 = scmp.lt.s32.totalorder %s684_s20, %s2370_s13 }
 0x116   : > { %p2367_p11 = pnand %p2365_p9, %p2906_p13  ;;  %p2373_p7 = scmp.lt.s32.totalorder %s2371_s0, %s2364_s18 }
 0x118   : > { %p2368_p4 = pneg %p2367_p11  ;;  %p2374_p12 = por %p2373_p7, %p2372_p2 }
 0x11a   : > { %p2375_p0 = pnand %p2374_p12, %p2368_p4 }
 0x11c   : > { %2378 = shalt.err (!%p2375_p0)
}
 0x11d   : > { %p3920_p1 = scmp.ne.s32.totalorder %s3889_s1, 0  ;;  %s3921_s30 = scalar_lea.sflag [#allocation12], %s2745_s12 }
 0x11e   : > { %p3922_p10 = scmp.ne.s32.totalorder %s3874_s10, 0 }
 0x11f   : > { %2031 = dma.hbm_to_vmem [thread:$0]  (!%p3920_p1), %s3094_s19, 64, %s684_s20, %s3921_s30  }
 0x120   : > { %692 = sbr.rel (%p3922_p10) target bundleno = 667 (0x29b), region = 72  ;;  %s3923_s14 = sld [smem:[#allocation28_spill]] (!%p3922_p10) }
 0x121   : > { %s3924_s27 = sld [smem:[#allocation38_spill]] (!%p3922_p10) }
 0x126   : > { %s694_s28 = sand.u32 (!%p3922_p10), 1, %s3923_s14  }
 0x127   : > { %s3119_s11 = sshll.u32 %s694_s28, 2  ;;  %s695_s23 = scalar_lea.sflag [#allocation3], %s694_s28 }
 0x128   : > { %p3925_p13 = scmp.ne.s32.totalorder %s3924_s27, 0 }
 0x12a   : > { %2464 = dma.done.wait (%p3925_p13), %s695_s23, 64  }
 0x12b   : > { %2466 = vsyncadd (%p3925_p13), %s695_s23, 4294967232  ;;  %s3926_s12 = sld [smem:[#allocation39_spill]]  ;;  %s703_s1 = sand.u32 1, %s2703_s22  }
 0x12c   : > { %s3128_s19 = sand.u32 1, %s2513_s29   ;;  %s704_s5 = scalar_lea.sflag [#allocation6], %s703_s1 }
 0x12d   : > { %s1855_s10 = sshll.u32 %s3128_s19, 4 }
 0x12e   : > { %s3131_s20 = scalar_lea.vmem [#allocation5], %s1855_s10 }
 0x131   : > { %p3927_p3 = scmp.ne.s32.totalorder %s3926_s12, 0 }
 0x133   : > { %2468 = dma.done.wait (%p3927_p3), %s704_s5, 256  }
 0x134   : > { %2470 = vsyncadd (%p3927_p3), %s704_s5, 4294967040  ;;  %s3928_s25 = sld [smem:[#allocation24_spill]]  ;;  %s3929_s8 = sld [smem:[#allocation23_spill]] }
 0x13a   : > { %s714_s17 = sand.u32 1, %s3928_s25   ;;  %p3930_p8 = scmp.ne.s32.totalorder %s3929_s8, 0 }
 0x13b   : > { %s3138_s3 = sshll.u32 %s714_s17, 2 }
 0x13c   : > { %2472 = dma.done.wait (%p3930_p8), %s704_s5, 64  }
 0x13d   : > { %2474 = vsyncadd (%p3930_p8), %s704_s5, 4294967232  ;;  %s722_s22 = scalar_lea.sflag [#allocation9], %s703_s1 }
 0x13e   : > { %2476 = dma.done.wait (%p3925_p13), %s722_s22, 64  }
 0x13f   : > { %2478 = vsyncadd (%p3925_p13), %s722_s22, 4294967232  ;;  %s3150_s18 = scalar_lea.vmem [#allocation10], %s1855_s10 }
 0x140   : > { %2480 = dma.done.wait (%p3927_p3), %s722_s22, 256  }
 0x141   : > { %2482 = vsyncadd (%p3927_p3), %s722_s22, 4294967040  ;;  %s740_s4 = scalar_lea.sflag [#allocation12], %s703_s1 }
 0x142   : > { %2484 = dma.done.wait (%p3930_p8), %s740_s4, 64  }
 0x143   : > { %2486 = vsyncadd (%p3930_p8), %s740_s4, 4294967232 }
 0x144   : > { %2488 = dma.done.wait (%p3925_p13), %s740_s4, 64  }
 0x145   : > { %2490 = vsyncadd (%p3925_p13), %s740_s4, 4294967232  ;;  %s3931_s30 = sld [smem:[#allocation29_spill]]  ;;  %s3932_s14 = sld [smem:[#allocation30_spill]]  ;;  %v901_v0 = vlaneseq  ;;  %v3839_v22 = vmov 0.0   ;;  %v1916_v39 = vld [vmem:[%s3131_s20] sm:$0xff]   ;;  %v1932_v45 = vld [vmem:[%s3131_s20 + $0x8] sm:$0xff]  }
 0x146   : > { %s3933_s5 = sld [smem:[#allocation52_spill]]  ;;  %s3934_s17 = sld [smem:[#allocation54_spill]]  ;;  %v1917_v49 = vunpack.c.l.bf16 %v1916_v39  ;;  %v1918_v50 = vunpack.c.h.bf16 %v1916_v39  ;;  %v1921_v51 = vunpack.c.l.bf16 %v1932_v45  ;;  %v1922_v54 = vunpack.c.h.bf16 %v1932_v45 }
 0x147   : > { %v3171_v1 = vshrl.u32 %v901_v0, 7  ;;  %s3940_s1 = sld [smem:[#allocation44_spill]]  ;;  %s3941_s15 = sld [smem:[#allocation43_spill]]  ;;  %vm1223_vm10 = vcmask 64512   ;;  %vm1517_vm11 = vcmask 1040384   ;;  %vm1519_vm12 = vcmask 58368  }
 0x148   : > { %s3945_s25 = sld [smem:[#allocation51_spill]]  ;;  %s1861_s20 = sshll.u32 %s3128_s19, 1 }
 0x149   : > { %v903_v2 = vadd.s32 8, %v3171_v1  ;;  %v906_v3 = vand.u32 7, %v3171_v1  ;;  %v972_v4 = vsub.s32 1, %v3171_v1  ;;  %v980_v5 = vsub.s32 4, %v3171_v1  ;;  %s3963_s8 = sld [smem:[#allocation33_spill]] }
 0x14a   : > { %v992_v6 = vsub.s32 7, %v3171_v1  ;;  %v1004_v7 = vsub.s32 0, %v3171_v1  ;;  %v1012_v9 = vsub.s32 3, %v3171_v1  ;;  %v1024_v12 = vsub.s32 6, %v3171_v1 }
 0x14b   : > { %s1862_s28 = sshll.u32 %s3931_s30, 2  ;;  %p847_p5 = scmp.lt.s32.totalorder %s3932_s14, 1  ;;  %v907_v15 = vand.u32 7, %v903_v2  ;;  %vm3205_vm0 = vcmp.gt.s32.totalorder %v906_v3, 0  ;;  %vm3209_vm1 = vcmp.lt.s32.totalorder %v906_v3, 7  ;;  %v1036_v19 = vsub.s32 2, %v3171_v1 }
 0x14c   : > { %p849_p6 = scmp.lt.s32.totalorder %s1862_s28, 7  ;;  %s1866_s23 = sadd.s32 4294967295, %s1862_s28  ;;  %v2153_v8 = vld [vmem:[%s3933_s5] sm:$0xff]   ;;  %v2155_v11 = vld [vmem:[%s3933_s5 + $0x8] sm:$0xff]   ;;  %v2157_v14 = vld [vmem:[%s3933_s5 + $0x10] sm:$0xff]   ;;  %v3224_v23 = vsel %vm3205_vm0, 1.0, %v3839_v22 }
 0x14d   : > { %s3169_s12 = scalar_select %p847_p5, %s3932_s14, 1  ;;  %v2154_v10 = vld [vmem:[%s3934_s17] sm:$0xff]   ;;  %1954 = vmatprep.subr.bf16.mxu0 %v2153_v8  ;;  %v2159_v20 = vld [vmem:[%s3933_s5 + $0x18] sm:$0xff]   ;;  %vm911_vm2 = vcmp.gt.s32.totalorder %v907_v15, 0  ;;  %vm923_vm3 = vcmp.lt.s32.totalorder %v907_v15, 7  ;;  %v3235_v26 = vsel %vm3209_vm1, 1.0, %v3839_v22 }
 0x14e   : > { %p858_p9 = scmp.gt.s32.totalorder %s1866_s23, 0  ;;  %s4005_s28 = smov (!%p849_p6, %s1862_s28), 7  ;;  %1974 = vmatprep.subr.bf16.mxu1 %v2154_v10  ;;  %1955 = vmatpush3.bf16.msra.mxu0 %v2153_v8  ;;  %v3227_v24 = vsel %vm911_vm2, 1.0, %v3839_v22  ;;  %v2161_v25 = vld [vmem:[%s3933_s5 + $0x20] sm:$0xff]   ;;  %v3244_v28 = vsel %vm923_vm3, 1.0, %v3839_v22  ;;  %v2163_v29 = vld [vmem:[%s3933_s5 + $0x28] sm:$0xff]  }
 0x14f   : > { %s1863_s27 = sshll.u32 %s3169_s12, 3  ;;  %p1867_p11 = scmp.lt.s32.totalorder %s1866_s23, 7  ;;  %1975 = vmatpush3.bf16.msra.mxu1 %v2154_v10  ;;  %1956 = vmatprep.subr.bf16.mxu0 %v2155_v11  ;;  %v1044_v30 = vsub.s32 5, %v3171_v1  ;;  %v3259_v32 = vadd.s32 16, %v3171_v1  ;;  %v3271_v40 = vadd.s32 24, %v3171_v1  ;;  %v2165_v52 = vld [vmem:[%s3933_s5 + $0x30] sm:$0xff]  }
 0x150   : > { %s3935_s22 = smov %s3934_s17  ;;  %s3190_s13 = sadd.s32 %s1863_s27, %s4005_s28  ;;  %v968_v57 = vld [vmem:[%s3945_s25] sm:$0xff]  ;;  %vm1070_vm4 = vcmp.lt.s32.totalorder %v3171_v1, 1  ;;  %vm1087_vm5 = vcmp.lt.s32.totalorder %v3171_v1, 7 }
 0x151   : > { %s859_s4 = scalar_select %p858_p9, %s1866_s23, 0  ;;  %v2156_v13 = vld [vmem:[%s3935_s22 + $0x8] sm:$0xff]   ;;  %v2158_v16 = vld [vmem:[%s3935_s22 + $0x10] sm:$0xff]   ;;  %v2160_v21 = vld [vmem:[%s3935_s22 + $0x18] sm:$0xff]   ;;  %v3303_v3 = vrot.slane %v968_v57, %v972_v4  ;;  %v3307_v8 = vrot.slane %v968_v57, %v980_v5  ;;  %v3311_v10 = vrot.slane %v968_v57, %v992_v6  ;;  %v908_v17 = vand.u32 7, %v3259_v32 }
 0x152   : > { %1976 = vmatprep.subr.bf16.mxu1 %v2156_v13  ;;  %s1864_s17 = sshll.u32 %s3190_s13, 2  ;;  %p895_p4 = scmp.gt.s32.totalorder %s3931_s30, 0  ;;  %1957 = vmatpush3.bf16.msra.mxu0 %v2155_v11  ;;  %v2162_v27 = vld [vmem:[%s3935_s22 + $0x20] sm:$0xff]   ;;  %v2164_v31 = vld [vmem:[%s3935_s22 + $0x28] sm:$0xff]   ;;  %v2166_v58 = vld [vmem:[%s3935_s22 + $0x30] sm:$0xff]   ;;  %v3315_v11 = vrot.slane %v968_v57, %v1004_v7  ;;  %v3365_v45 = vrot.slane %v968_v57, %v1024_v12 }
 0x153   : > { %s4007_s4 = smov (!%p1867_p11, %s859_s4), 7  ;;  %1977 = vmatpush3.bf16.msra.mxu1 %v2156_v13  ;;  %1958 = vmatprep.subr.bf16.mxu0 %v2157_v14  ;;  %p898_p2 = scmp.lt.s32.totalorder %s3931_s30, 1  ;;  %v3319_v13 = vrot.slane %v968_v57, %v1012_v9  ;;  %vm912_vm6 = vcmp.gt.s32.totalorder %v908_v17, 0  ;;  %vm3562_vm8 = vcmp.lt.s32.totalorder %v908_v17, 7 }
 0x154   : > { %s865_s23 = sadd.s32 %s4007_s4, %s1863_s27  ;;  %1978 = vmatprep.subr.bf16.mxu1 %v2158_v16  ;;  %s854_s24 = scalar_lea.vmem %s3941_s15, %s1864_s17 }
 0x155   : > { %s1873_s27 = sshll.u32 %s865_s23, 2  ;;  %s3942_s13 = scalar_lea.vmem [#allocation7], %s3138_s3  ;;  %v1908_v37 = vld [vmem:[%s854_s24] sm:$0xff]   ;;  %v1931_v38 = vld [vmem:[%s854_s24 + $0x8] sm:$0xff]  }
 0x156   : > { %1959 = vmatpush3.bf16.msra.mxu0 %v2157_v14  ;;  %s867_s10 = scalar_lea.vmem %s3940_s1, %s1873_s27  ;;  %v936_v34 = vld [vmem:[%s3942_s13] sm:$0xf]  ;;  %v1909_v41 = vunpack.c.l.bf16 %v1908_v37  ;;  %v1910_v42 = vunpack.c.h.bf16 %v1908_v37  ;;  %v1913_v43 = vunpack.c.l.bf16 %v1931_v38  ;;  %v1914_v44 = vunpack.c.h.bf16 %v1931_v38  ;;  %s3943_s17 = scalar_lea.vmem [#allocation2], %s3119_s11  ;;  %v2167_v14 = vld [vmem:[%s3933_s5 + $0x38] sm:$0xff]  }
 0x157   : > { %1979 = vmatpush3.bf16.msra.mxu1 %v2158_v16  ;;  %1960 = vmatprep.subr.bf16.mxu0 %v2159_v20  ;;  %s896_s27 = scalar_select %p895_p4, 1, 0  ;;  %v934_v33 = vld [vmem:[%s867_s10] sm:$0xf]  ;;  %v937_v36 = vunpack.c.l.bf16 %v936_v34  ;;  %v1924_v37 = vld [vmem:[%s3150_s18] sm:$0xff]  }
 0x158   : > { %1980 = vmatprep.subr.bf16.mxu1 %v2160_v21  ;;  %s3267_s15 = scalar_select %p898_p2, 1, 0  ;;  %v935_v35 = vunpack.c.l.bf16 %v934_v33  ;;  %v961_v46 = vld [vmem:[%s3943_s17] sm:$0xf]  ;;  %v3291_v60 = vsub.f32 %v1909_v41, %v1917_v49  ;;  %v3293_v61 = vsub.f32 %v1910_v42, %v1918_v50  ;;  %v3295_v62 = vsub.f32 %v1913_v43, %v1921_v51 }
 0x159   : > { %s897_s26 = scvt.s32.f32 %s896_s27  ;;  %s3944_s23 = scalar_lea.vmem [#allocation8], %s3119_s11  ;;  %v962_v55 = vunpack.c.l.bf16 %v961_v46  ;;  %v3297_v63 = vsub.f32 %v1914_v44, %v1922_v54  ;;  %v3369_v46 = vrot.slane %v968_v57, %v1036_v19  ;;  %v3371_v51 = vunpack.c.l.bf16 %v1924_v37 }
 0x15a   : > { %1961 = vmatpush3.bf16.msra.mxu0 %v2159_v20  ;;  %v963_v47 = vld [vmem:[%s3944_s23] sm:$0xf]  ;;  %s900_s12 = scvt.s32.f32 %s3267_s15  ;;  %v938_v48 = vsub.f32 %v935_v35, %v937_v36  ;;  %s3946_s4 = smov %s3945_s25  ;;  %v2168_v20 = vld [vmem:[%s3935_s22 + $0x38] sm:$0xff]   ;;  %v1007_v34 = vmul.f32 %v3315_v11, %v3291_v60  ;;  %v1009_v35 = vmul.f32 %v3315_v11, %v3295_v62  ;;  %v1014_v36 = vmul.f32 %v3319_v13, %v3291_v60 }
 0x15b   : > { %1981 = vmatpush3.bf16.msra.mxu1 %v2160_v21  ;;  %1962 = vmatprep.subr.bf16.mxu0 %v2161_v25  ;;  %v3282_v53 = vstv %s897_s26  ;;  %v964_v56 = vunpack.c.l.bf16 %v963_v47  ;;  %v975_v21 = vmul.f32 %v3303_v3, %v3291_v60  ;;  %s3947_s26 = scalar_lea.vmem [#allocation11], %s3138_s3  ;;  %v995_v39 = vmul.f32 %v3311_v10, %v3295_v62  ;;  %v3361_v43 = vld [vmem:[%s3946_s4 + $0x8] ss:$0 sm:$0xff]  ;;  %s3948_s23 = scalar_lea.vmem [#allocation13], %s3119_s11 }
 0x15c   : > { %1982 = vmatprep.subr.bf16.mxu1 %v2162_v27  ;;  %v940_v59 = vmul.f32 %v3282_v53, %v938_v48  ;;  %v3299_v2 = vstv %s900_s12  ;;  %v1015_v41 = vmul.f32 %v3319_v13, %v3293_v61  ;;  %v1017_v42 = vmul.f32 %v3319_v13, %v3297_v63  ;;  %s3949_s24 = sld [smem:[#allocation53_spill]]  ;;  %s1901_s10 = sshll.u32 %s3932_s14, 1 }
 0x15d   : > { %v965_v0 = vsub.f32 %v962_v55, %v964_v56  ;;  %v1027_v54 = vmul.f32 %v3365_v45, %v3295_v62  ;;  %v976_v17 = vmul.f32 %v3303_v3, %v3293_v61  ;;  %s1533_s25 = sadd.s32 %s3931_s30, %s1901_s10  ;;  %s845_s28 = scalar_lea.vmem [#allocation14], %s1861_s20 }
 0x15e   : > { %1963 = vmatpush3.bf16.msra.mxu0 %v2161_v25  ;;  %v974_v16 = vmul.f32 %v3303_v3, %v940_v59  ;;  %v982_v25 = vmul.f32 %v3307_v8, %v3291_v60  ;;  %v1006_v33 = vmul.f32 %v3315_v11, %v940_v59  ;;  %v1019_v49 = vadd.f32 %v1015_v41, %v1007_v34  ;;  %s1902_s0 = sshll.u32 %s1533_s25, 5  ;;  %s1537_s27 = sshll.u32 %s845_s28, 4  ;;  %s3693_s27 = int_to_ptr.vmem [resolvable:$true] %s1537_s27 }
 0x15f   : > { %1983 = vmatpush3.bf16.msra.mxu1 %v2162_v27  ;;  %1964 = vmatprep.subr.bf16.mxu0 %v2163_v29  ;;  %v3325_v15 = vmul.f32 %v3299_v2, %v965_v0  ;;  %v983_v27 = vmul.f32 %v3307_v8, %v3293_v61  ;;  %v1021_v50 = vadd.f32 %v1017_v42, %v1009_v35  ;;  %s1522_s30 = scalar_lea.sflag [#allocation4], %s3128_s19  ;;  %s2379_s14 = scalar_lea.vmem %s3693_s27, 32 }
 0x160   : > { %1984 = vmatprep.subr.bf16.mxu1 %v2164_v31  ;;  %v986_v38 = vadd.f32 %v982_v25, %v974_v16  ;;  %v1018_v44 = vadd.f32 %v1014_v36, %v1006_v33  ;;  %v1038_v56 = vmul.f32 %v3369_v46, %v940_v59  ;;  %v1040_v0 = vmul.f32 %v3369_v46, %v3293_v61  ;;  %p2380_p7 = scmp.ne.s32.totalorder %s3693_s27, %s2379_s14  ;;  %p3966_p12 = scmp.ne.s32.totalorder %s3963_s8, 0 }
 0x161   : > { %v987_v48 = vadd.f32 %v983_v27, %v975_v21  ;;  %v1029_v55 = vmul.f32 %v3365_v45, %v3325_v15  ;;  %v3387_v16 = vrot.slane %v968_v57, %v1044_v30  ;;  %v1058_v21 = vmul.f32 %v3361_v43, %v3293_v61 }
 0x162   : > { %1965 = vmatpush3.bf16.msra.mxu0 %v2163_v29  ;;  %v994_v29 = vmul.f32 %v3311_v10, %v3293_v61  ;;  %v3391_v59 = vadd.f32 %v1027_v54, %v1019_v49  ;;  %v3417_v54 = vunpack.c.h.bf16 %v1924_v37  ;;  %p2381_p0 = pnand %p2380_p7, %p3966_p12 }
 0x163   : > { %1985 = vmatpush3.bf16.msra.mxu1 %v2164_v31  ;;  %1966 = vmatprep.subr.bf16.mxu0 %v2165_v52  ;;  %v1237_v31 = vld [vmem:[%s3947_s26] sm:$0xf]  ;;  %v3393_v27 = vadd.f32 %v1029_v55, %v1021_v50  ;;  %v1047_v57 = vmul.f32 %v3387_v16, %v3293_v61  ;;  %v1048_v33 = vmul.f32 %v3387_v16, %v3295_v62  ;;  %v1933_v50 = vld [vmem:[%s3150_s18 + $0x8] sm:$0xff]   ;;  %s3964_s26 = sld [smem:[#allocation55_spill]] }
 0x164   : > { %1986 = vmatprep.subr.bf16.mxu1 %v2166_v58  ;;  %v1238_v47 = vunpack.c.l.bf16 %v1237_v31  ;;  %v1046_v31 = vmul.f32 %v3387_v16, %v3291_v60  ;;  %v998_v34 = vadd.f32 %v994_v29, %v986_v38  ;;  %v3837_v36 = vrot.slane %v3391_v59, 7  ;;  %p2382_p1 = pneg %p2381_p0 }
 0x165   : > { %v3838_v41 = vrot.slane %v3393_v27, 7  ;;  %v999_v42 = vadd.f32 %v995_v39, %v987_v48  ;;  %v1248_v39 = vld [vmem:[%s3948_s23] sm:$0xf]  ;;  %s2561_s23 = smov [#allocation14]  }
 0x166   : > { %1967 = vmatpush3.bf16.msra.mxu0 %v2165_v52  ;;  %v1026_v52 = vmul.f32 %v3365_v45, %v3293_v61  ;;  %v1239_v38 = vmul.f32 %v1238_v47, %v3282_v53  ;;  %s2383_s18 = sshll.u32 %s2561_s23, 4  ;;  %s2384_s18 = int_to_ptr.vmem [resolvable:$false] %s2383_s18 }
 0x167   : > { %1987 = vmatpush3.bf16.msra.mxu1 %v2166_v58  ;;  %1968 = vmatprep.subr.bf16.mxu0 %v2167_v14  ;;  %v1039_v58 = vmul.f32 %v3369_v46, %v3291_v60  ;;  %v1052_v60 = vadd.f32 %v1048_v33, %v1040_v0  ;;  %v1251_v0 = vld [vmem:[%s3949_s24] sm:$0xff]  ;;  %s2385_s12 = scalar_lea.vmem %s2384_s18, 64  ;;  %p2386_p10 = scmp.lt.s32.totalorder %s3693_s27, %s2384_s18 }
 0x168   : > { %1988 = vmatprep.subr.bf16.mxu1 %v2168_v20  ;;  %v1030_v25 = vadd.f32 %v1026_v52, %v1018_v44  ;;  %v1050_v44 = vadd.f32 %v1046_v31, %v1038_v56  ;;  %v3430_v31 = vunpack.c.l.bf16 %v1933_v50  ;;  %v3434_v53 = vrot.slane %v1251_v0, %v972_v4  ;;  %p2387_p13 = scmp.lt.s32.totalorder %s2385_s12, %s2379_s14 }
 0x169   : > { %v1051_v49 = vadd.f32 %v1047_v57, %v1039_v58  ;;  %v3438_v37 = vrot.slane %v1251_v0, %v980_v5  ;;  %v1249_v57 = vunpack.c.l.bf16 %v1248_v39  ;;  %v3467_v39 = vunpack.c.h.bf16 %v1933_v50  ;;  %s3965_s3 = smov %s3964_s26  ;;  %s3691_s17 = scalar_lea.hbm %s3964_s26, %s1902_s0 }
 0x16a   : > { %1969 = vmatpush3.bf16.msra.mxu0 %v2167_v14  ;;  %v1059_v14 = vmul.f32 %v3361_v43, %v3295_v62  ;;  %v1066_v35 = vrot.slane %v1030_v25, 7  ;;  %v3421_v48 = vadd.f32 %v1058_v21, %v1050_v44  ;;  %v1258_v44 = vmul.f32 %v3371_v51, %v3434_v53  ;;  %p2388_p3 = por %p2387_p13, %p2386_p10 }
 0x16b   : > { %1989 = vmatpush3.bf16.msra.mxu1 %v2168_v20  ;;  %v1060_v20 = vmul.f32 %v3361_v43, %v3297_v63 }
 0x16c   : > { %v1073_v52 = vsel %vm1070_vm4, %v1066_v35, %v3837_v36  ;;  %v1074_v29 = vsel %vm1070_vm4, %v3838_v41, %v1066_v35  ;;  %v1063_v55 = vadd.f32 %v1059_v14, %v1051_v49  ;;  %v3835_v47 = vrot.slane %v3421_v48, 1  ;;  %p2389_p8 = pnand %p2388_p3, %p2382_p1 }
 0x16d   : > { %v3423_v56 = vadd.f32 %v1060_v20, %v1052_v60  ;;  %v1075_v58 = vmul.f32 %v3224_v23, %v1074_v29  ;;  %v1076_v25 = vmul.f32 %v3227_v24, %v1073_v52  ;;  %v1257_v35 = vmul.f32 %v3434_v53, %v1239_v38 }
 0x16e   : > { %v1084_v21 = vrot.slane %v1063_v55, 1  ;;  %v1265_v49 = vmul.f32 %v3371_v51, %v3438_v37  ;;  %v3461_v52 = vrot.slane %v1251_v0, %v992_v6  ;;  %v3465_v29 = vrot.slane %v1251_v0, %v1004_v7 }
 0x16f   : > { %v3836_v14 = vrot.slane %v3423_v56, 1  ;;  %v1079_v33 = vadd.f32 %v1075_v58, %v998_v34  ;;  %v1080_v20 = vadd.f32 %v1076_v25, %v999_v42  ;;  %v1266_v34 = vmul.f32 %v3417_v54, %v3438_v37 }
 0x170   : > { %v1090_v5 = vsel %vm1087_vm5, %v3835_v47, %v1084_v21  ;;  %v3470_v55 = vmul.f32 %v1249_v57, %v3299_v2  ;;  %v3474_v58 = vrot.slane %v1251_v0, %v1012_v9  ;;  %v3478_v25 = vrot.slane %v1251_v0, %v1024_v12 }
 0x171   : > { %v1089_v4 = vsel %vm1087_vm5, %v1084_v21, %v3836_v14  ;;  %v1092_v42 = vmul.f32 %v3235_v26, %v1090_v5  ;;  %v1270_v5 = vadd.f32 %v1266_v34, %v1258_v44  ;;  %v1289_v7 = vmul.f32 %v3465_v29, %v1239_v38 }
 0x172   : > { %v1093_v60 = vmul.f32 %v3244_v28, %v1089_v4  ;;  %v1269_v4 = vadd.f32 %v1265_v49, %v1257_v35  ;;  %v1290_v50 = vmul.f32 %v3371_v51, %v3465_v29  ;;  %v1292_v2 = vmul.f32 %v3430_v31, %v3465_v29 }
 0x173   : > { %v1096_v21 = vadd.f32 %v1092_v42, %v1079_v33  ;;  %v1297_v9 = vmul.f32 %v3371_v51, %v3474_v58  ;;  %v1277_v12 = vmul.f32 %v3417_v54, %v3461_v52  ;;  %v1278_v33 = vmul.f32 %v3430_v31, %v3461_v52 }
 0x174   : > { %v1097_v6 = vadd.f32 %v1093_v60, %v1080_v20  ;;  %v3494_v20 = vld [vmem:[%s3949_s24 + $0x8] ss:$0 sm:$0xff]  ;;  %v1298_v35 = vmul.f32 %v3417_v54, %v3474_v58  ;;  %v1300_v44 = vmul.f32 %v3467_v39, %v3474_v58  ;;  %v1309_v34 = vmul.f32 %v3417_v54, %v3478_v25 }
 0x175   : > { %v1100_v57 = vmax.f32 %v1096_v21, 0.0  ;;  %v1301_v49 = vadd.f32 %v1297_v9, %v1289_v7  ;;  %v1310_v60 = vmul.f32 %v3430_v31, %v3478_v25  ;;  %v1312_v21 = vmul.f32 %v3478_v25, %v3470_v55 }
 0x176   : > { %v1101_v47 = vmax.f32 %v1097_v6, 0.0  ;;  %v3508_v6 = vrot.slane %v1251_v0, %v1036_v19  ;;  %v1302_v14 = vadd.f32 %v1298_v35, %v1290_v50  ;;  %v1304_v36 = vadd.f32 %v1300_v44, %v1292_v2 }
 0x177   : > { %v1313_v41 = vadd.f32 %v1309_v34, %v1301_v49  ;;  %v3512_v7 = vrot.slane %v1251_v0, %v1044_v30  ;;  %v1341_v19 = vmul.f32 %v3417_v54, %v3494_v20  ;;  %v1342_v2 = vmul.f32 %v3430_v31, %v3494_v20 }
 0x178   : > { %v1104_v42 = vpack.c.bf16 %v1101_v47, %v1100_v57  ;;  %v1321_v47 = vmul.f32 %v3508_v6, %v1239_v38  ;;  %v1322_v9 = vmul.f32 %v3371_v51, %v3508_v6  ;;  %v1323_v57 = vmul.f32 %v3417_v54, %v3508_v6 }
 0x179   : > { %v3521_v22 = vadd.f32 %v1310_v60, %v1302_v14  ;;  %v3523_v50 = vadd.f32 %v1312_v21, %v1304_v36  ;;  %v1329_v30 = vmul.f32 %v3371_v51, %v3512_v7  ;;  %v1330_v0 = vmul.f32 %v3417_v54, %v3512_v7 }
 0x17a   : > { %1970 = vmatprep.mubr.bf16.mxu0 %v1104_v42  ;;  %v1331_v38 = vmul.f32 %v3430_v31, %v3512_v7  ;;  %v1343_v35 = vmul.f32 %v3467_v39, %v3494_v20  ;;  %v1349_v44 = vrot.slane %v1313_v41, 7  ;;  %v1281_v51 = vadd.f32 %v1277_v12, %v1269_v4 }
 0x17b   : > { %v1333_v14 = vadd.f32 %v1329_v30, %v1321_v47  ;;  %v1334_v49 = vadd.f32 %v1330_v0, %v1322_v9  ;;  %v1350_v36 = vrot.slane %v3521_v22, 7  ;;  %v1352_v34 = vrot.slane %v3523_v50, 7 }
 0x17c   : > { %v1282_v42 = vadd.f32 %v1278_v33, %v1270_v5  ;;  %v1335_v60 = vadd.f32 %v1331_v38, %v1323_v57  ;;  %v3950_v57 = vand.u32 7, %v3271_v40  ;;  %v3955_v38 = vmov 0.0  }
 0x17d   : > { %v3539_v21 = vadd.f32 %v1341_v19, %v1333_v14  ;;  %v1346_v18 = vadd.f32 %v1342_v2, %v1334_v49  ;;  %v1355_v41 = vsel %vm1070_vm4, %v1349_v44, %v1350_v36  ;;  %v1356_v47 = vsel %vm1070_vm4, %v1352_v34, %v1349_v44 }
 0x17e   : > { %v3549_v9 = vadd.f32 %v1343_v35, %v1335_v60  ;;  %v1357_v4 = vmul.f32 %v3224_v23, %v1356_v47  ;;  %v1358_v5 = vmul.f32 %v3227_v24, %v1355_v41  ;;  %vm3556_vm7 = vcmp.gt.s32.totalorder %v3950_v57, 0 }
 0x17f   : > { %v1365_v12 = vrot.slane %v3539_v21, 1  ;;  %v1366_v33 = vrot.slane %v1346_v18, 1  ;;  %v3568_v24 = vsel %vm912_vm6, 1.0, %v3955_v38  ;;  %v3956_v18 = vmov %v3950_v57 }
 0x180   : > { %v1361_v0 = vadd.f32 %v1357_v4, %v1281_v51  ;;  %v1367_v23 = vrot.slane %v3549_v9, 1  ;;  %vm3572_vm9 = vcmp.lt.s32.totalorder %v3956_v18, 7  ;;  %v1362_v35 = vadd.f32 %v1358_v5, %v1282_v42 }
 0x181   : > { %v1371_v32 = vsel %vm1087_vm5, %v1365_v12, %v1366_v33  ;;  %v977_v44 = vmul.f32 %v3303_v3, %v3295_v62  ;;  %v984_v49 = vmul.f32 %v3307_v8, %v3295_v62  ;;  %v985_v51 = vmul.f32 %v3307_v8, %v3297_v63 }
 0x182   : > { %v1370_v40 = vsel %vm1087_vm5, %v1366_v33, %v1367_v23  ;;  %v1373_v14 = vmul.f32 %v3235_v26, %v1371_v32  ;;  %v996_v60 = vmul.f32 %v3311_v10, %v3297_v63  ;;  %v997_v3 = vmul.f32 %v3311_v10, %v3325_v15 }
 0x183   : > { %v1374_v42 = vmul.f32 %v3244_v28, %v1370_v40  ;;  %v1008_v41 = vmul.f32 %v3315_v11, %v3293_v61  ;;  %v988_v4 = vadd.f32 %v984_v49, %v976_v17  ;;  %v989_v26 = vadd.f32 %v985_v51, %v977_v44 }
 0x184   : > { %v1377_v47 = vadd.f32 %v1373_v14, %v1361_v0  ;;  %v1016_v5 = vmul.f32 %v3319_v13, %v3295_v62  ;;  %v1028_v8 = vmul.f32 %v3365_v45, %v3297_v63  ;;  %v1041_v28 = vmul.f32 %v3369_v46, %v3295_v62 }
 0x185   : > { %v1378_v33 = vadd.f32 %v1374_v42, %v1362_v35  ;;  %v1049_v57 = vmul.f32 %v3387_v16, %v3297_v63  ;;  %v1877_v61 = vsel %vm3556_vm7, 1.0, %v3955_v38  ;;  %v1880_v11 = vsel %vm3562_vm8, 1.0, %v3955_v38 }
 0x186   : > { %v1381_v10 = vmax.f32 %v1377_v47, 0.0  ;;  %v1020_v13 = vadd.f32 %v1016_v5, %v1008_v41  ;;  %v1061_v45 = vmul.f32 %v3361_v43, %v3325_v15  ;;  %v1259_v62 = vmul.f32 %v3417_v54, %v3434_v53 }
 0x187   : > { %v1382_v0 = vmax.f32 %v1378_v33, 0.0  ;;  %v1053_v18 = vadd.f32 %v1049_v57, %v1041_v28  ;;  %v1881_v63 = vsel %vm3572_vm9, 1.0, %v3955_v38  ;;  %v1000_v46 = vadd.f32 %v996_v60, %v988_v4 }
 0x188   : > { %v1032_v16 = vadd.f32 %v1028_v8, %v1020_v13  ;;  %v1267_v19 = vmul.f32 %v3430_v31, %v3438_v37  ;;  %v1001_v35 = vadd.f32 %v997_v3, %v989_v26  ;;  %v1260_v17 = vmul.f32 %v3430_v31, %v3434_v53 }
 0x189   : > { %v1385_v30 = vpack.c.bf16 %v1382_v0, %v1381_v10  ;;  %v1065_v32 = vadd.f32 %v1061_v45, %v1053_v18  ;;  %v1268_v15 = vmul.f32 %v3467_v39, %v3438_v37  ;;  %v1279_v43 = vmul.f32 %v3467_v39, %v3461_v52 }
 0x18a   : > { %v1068_v44 = vrot.slane %v1032_v16, 7  ;;  %v1291_v38 = vmul.f32 %v3417_v54, %v3465_v29  ;;  %v1271_v40 = vadd.f32 %v1267_v19, %v1259_v62  ;;  %v1280_v14 = vmul.f32 %v3461_v52, %v3470_v55 }
 0x18b   : > { %1990 = vmatprep.mubr.bf16.mxu1 %v1385_v30  ;;  %v1086_v2 = vrot.slane %v1065_v32, 1  ;;  %v1299_v49 = vmul.f32 %v3430_v31, %v3474_v58  ;;  %v3959_v53 = vrot.slane %v3393_v27, 7  ;;  %v3960_v51 = vrot.slane %v3391_v59, 7 }
 0x18c   : > { %v1311_v54 = vmul.f32 %v3467_v39, %v3478_v25  ;;  %v1324_v29 = vmul.f32 %v3430_v31, %v3508_v6  ;;  %v3961_v58 = vrot.slane %v3423_v56, 1  ;;  %v3962_v3 = vrot.slane %v3421_v48, 1 }
 0x18d   : > { %v1071_v37 = vsel %vm1070_vm4, %v1068_v44, %v3959_v53  ;;  %v1072_v42 = vsel %vm1070_vm4, %v3960_v51, %v1068_v44  ;;  %v1303_v4 = vadd.f32 %v1299_v49, %v1291_v38  ;;  %v1332_v25 = vmul.f32 %v3467_v39, %v3512_v7 }
 0x18e   : > { %v1077_v52 = vmul.f32 %v3568_v24, %v1072_v42  ;;  %v1078_v60 = vmul.f32 %v1877_v61, %v1071_v37  ;;  %v1088_v27 = vsel %vm1087_vm5, %v3961_v58, %v1086_v2  ;;  %v1091_v59 = vsel %vm1087_vm5, %v1086_v2, %v3962_v3 }
 0x18f   : > { %v1094_v41 = vmul.f32 %v1880_v11, %v1088_v27  ;;  %v1095_v47 = vmul.f32 %v1881_v63, %v1091_v59  ;;  %v1272_v26 = vadd.f32 %v1268_v15, %v1260_v17  ;;  %v1344_v56 = vmul.f32 %v3494_v20, %v3470_v55 }
 0x190   : > { %v1081_v31 = vadd.f32 %v1077_v52, %v1000_v46  ;;  %v1082_v6 = vadd.f32 %v1078_v60, %v1001_v35  ;;  %v1315_v5 = vadd.f32 %v1311_v54, %v1303_v4  ;;  %v1336_v33 = vadd.f32 %v1332_v25, %v1324_v29 }
 0x191   : > { %v1283_v0 = vadd.f32 %v1279_v43, %v1271_v40  ;;  %v1284_v18 = vadd.f32 %v1280_v14, %v1272_v26 }
 0x192   : > { %v1098_v8 = vadd.f32 %v1094_v41, %v1081_v31  ;;  %v1099_v28 = vadd.f32 %v1095_v47, %v1082_v6  ;;  %v1348_v48 = vadd.f32 %v1344_v56, %v1336_v33  ;;  %v1351_v57 = vrot.slane %v1315_v5, 7 }
 0x194   : > { %v1102_v10 = vmax.f32 %v1098_v8, 0.0  ;;  %v1103_v13 = vmax.f32 %v1099_v28, 0.0  ;;  %v1353_v39 = vsel %vm1070_vm4, %v1351_v57, %v1352_v34  ;;  %v1354_v55 = vsel %vm1070_vm4, %v1350_v36, %v1351_v57 }
 0x195   : > { %v1368_v20 = vrot.slane %v1348_v48, 1  ;;  %v1359_v45 = vmul.f32 %v3568_v24, %v1354_v55  ;;  %v1360_v62 = vmul.f32 %v1877_v61, %v1353_v39 }
 0x196   : > { %v1105_v7 = vpack.c.bf16 %v1103_v13, %v1102_v10 }
 0x197   : > { %v1369_v46 = vsel %vm1087_vm5, %v1367_v23, %v1368_v20  ;;  %v1372_v50 = vsel %vm1087_vm5, %v1368_v20, %v1365_v12  ;;  %v1363_v22 = vadd.f32 %v1359_v45, %v1283_v0  ;;  %v1364_v34 = vadd.f32 %v1360_v62, %v1284_v18 }
 0x198   : > { %1971 = vmatmul.mubr.bf16.vlgmr.msra.gmra.mrb[0].mxu0 %v1105_v7  ;;  %v1375_v16 = vmul.f32 %v1880_v11, %v1369_v46  ;;  %v1376_v36 = vmul.f32 %v1881_v63, %v1372_v50 }
 0x19a   : > { %v1379_v19 = vadd.f32 %v1375_v16, %v1363_v22  ;;  %v1380_v30 = vadd.f32 %v1376_v36, %v1364_v34 }
 0x19c   : > { %v1383_v35 = vmax.f32 %v1379_v19, 0.0  ;;  %v1384_v24 = vmax.f32 %v1380_v30, 0.0 }
 0x19e   : > { %v1386_v61 = vpack.c.bf16 %v1384_v24, %v1383_v35 }
 0x1a0   : > { %1991 = vmatmul.mubr.bf16.vlgmr.msra.gmra.mrb[0].mxu1 %v1386_v61 }
 0x26b   : > { %v1972_v9 = vpop.f32.mrb[0].mxu0 }
 0x26c   : > { %v1204_v32 = vpop.f32.mrb[1].mxu0  ;;  %v1221_v44 = vmax.f32 %v1972_v9, 0.0 }
 0x26d   : > { %v1219_v17 = vmax.f32 %v1204_v32, 0.0  ;;  %v1973_v23 = vpop.f32.mrb[2].mxu0 }
 0x26e   : > { %v1207_v21 = vpop.f32.mrb[3].mxu0  ;;  %v1222_v15 = vmax.f32 %v1973_v23, 0.0  ;;  %v1227_v43 = vsel %vm1223_vm10, %v1221_v44, 0.0 }
 0x26f   : > { %v1220_v1 = vmax.f32 %v1207_v21, 0.0  ;;  %v1224_v12 = vsel %vm1223_vm10, %v1219_v17, 0.0 }
 0x270   : > { %v1229_v49 = vsel %vm1223_vm10, %v1222_v15, 0.0 }
 0x271   : > { %v1225_v11 = vsel %vm1223_vm10, %v1220_v1, 0.0 }
 0x272   : > { %v1226_v63 = vadd.f32 %v1225_v11, %v1224_v12 }
 0x273   : > { %v1992_v38 = vpop.f32.mrb[0].mxu1 }
 0x274   : > { %v1485_v2 = vpop.f32.mrb[1].mxu1  ;;  %v1228_v40 = vadd.f32 %v1227_v43, %v1226_v63  ;;  %v1502_v42 = vmax.f32 %v1992_v38, 0.0 }
 0x275   : > { %v1500_v14 = vmax.f32 %v1485_v2, 0.0  ;;  %v1993_v53 = vpop.f32.mrb[2].mxu1 }
 0x276   : > { %v1230_v37 = vadd.f32 %v1229_v49, %v1228_v40  ;;  %v1488_v51 = vpop.f32.mrb[3].mxu1  ;;  %v1503_v60 = vmax.f32 %v1993_v53, 0.0  ;;  %v1507_v59 = vsel %vm1223_vm10, %v1502_v42, 0.0 }
 0x277   : > { %v1501_v54 = vmax.f32 %v1488_v51, 0.0  ;;  %v1504_v52 = vsel %vm1223_vm10, %v1500_v14, 0.0 }
 0x278   : > { %v1231_v29 = vrot.slane %v1230_v37, 4  ;;  %v1509_v4 = vsel %vm1223_vm10, %v1503_v60, 0.0 }
 0x279   : > { %v1505_v58 = vsel %vm1223_vm10, %v1501_v54, 0.0 }
 0x27a   : > { %v1232_v27 = vadd.f32 %v1231_v29, %v1230_v37  ;;  %v1506_v3 = vadd.f32 %v1505_v58, %v1504_v52 }
 0x27c   : > { %v1233_v41 = vrot.slane %v1232_v27, 2  ;;  %v1508_v47 = vadd.f32 %v1507_v59, %v1506_v3 }
 0x27e   : > { %v1510_v25 = vadd.f32 %v1509_v4, %v1508_v47  ;;  %v1234_v31 = vadd.f32 %v1233_v41, %v1232_v27 }
 0x280   : > { %v1511_v6 = vrot.slane %v1510_v25, 4  ;;  %v1235_v56 = vrot.slane %v1234_v31, 1 }
 0x282   : > { %v1512_v26 = vadd.f32 %v1511_v6, %v1510_v25  ;;  %v1236_v8 = vadd.f32 %v1235_v56, %v1234_v31 }
 0x284   : > { %v1513_v5 = vrot.slane %v1512_v26, 2 }
 0x286   : > { %v1514_v33 = vadd.f32 %v1513_v5, %v1512_v26 }
 0x288   : > { %v1515_v28 = vrot.slane %v1514_v33, 1 }
 0x28a   : > { %v1516_v48 = vadd.f32 %v1515_v28, %v1514_v33 }
 0x28c   : > { %v1518_v57 = vsel %vm1517_vm11, %v1236_v8, %v1516_v48 }
 0x28d   : > { %1520 = vst.msk [vmem:[%s845_s28] sm:$0x3] %vm1519_vm12, %v1518_v57 }
 0x28e   : > { %2392 = shalt.err (!%p2389_p8)
}
 0x28f   : > { %s2393_s19 = scalar_lea.hbm %s3691_s17, 32  ;;  %s2397_s20 = scalar_lea.hbm %s3965_s3, 128 }
 0x290   : > { %p2394_p5 = scmp.ne.s32.totalorder %s3691_s17, %s2393_s19  ;;  %p2398_p11 = scmp.lt.u32.totalorder %s3691_s17, %s3965_s3 }
 0x291   : > { %p2399_p4 = scmp.lt.u32.totalorder %s2397_s20, %s2393_s19  ;;  %p2401_p7 = scmp.lt.u32.totalorder %s2393_s19, %s3691_s17 }
 0x292   : > { %p2395_p6 = pnand %p2394_p5, %p3966_p12 }
 0x293   : > { %p2400_p2 = por %p2399_p4, %p2398_p11 }
 0x294   : > { %p2396_p9 = pneg %p2395_p6 }
 0x295   : > { %p2402_p0 = por %p2401_p7, %p2400_p2 }
 0x297   : > { %p2403_p1 = pnand %p2402_p0, %p2396_p9 }
 0x299   : > { %2406 = shalt.err (!%p2403_p1)
}
 0x29a   : > { %2008 = dma.vmem_to_hbm [thread:$0]  (%p3966_p12), %s3693_s27, 32, %s3691_s17, %s1522_s30  }
 0x29b PF: > { %s3967_s0 = sld [smem:[#allocation26_spill]]  ;;  %s3968_s28 = sld [smem:[#allocation34_spill]] }
 0x29c   : > { %p2037_p10 = scmp.ge.s32.totalorder %s2549_s21, 2 }
 0x2a1   : > { %s1549_s13 = sand.u32 1, %s3967_s0   ;;  %p3969_p13 = scmp.ne.s32.totalorder %s3968_s28, 0 }
 0x2a2   : > { %s1550_s15 = scalar_lea.sflag [#allocation4], %s1549_s13 }
 0x2a3   : > { %p2033_p3 = pnand %p2037_p10, %p3969_p13 }
 0x2a5   : > { %2492 = dma.done.wait (!%p2033_p3), %s1550_s15, 32  }
 0x2a6   : > { %2494 = vsyncadd (!%p2033_p3), %s1550_s15, 4294967264  ;;  %s38_s21 = sadd.s32 1, %s2549_s21   ;;  %s3971_s25 = sld [smem:[#allocation24_spill]] }
 0x2a7   : > { %p3722_p8 = scmp.ge.s32.totalorder %s38_s21, 6   ;;  %s3972_s8 = sld [smem:[#allocation25_spill]] }
 0x2a8   : > { %s3973_s27 = sld [smem:[#allocation42_spill]]  ;;  %s3975_s30 = sld [smem:[#allocation41_spill]] }
 0x2a9   : > { %s3974_s17 = sld [smem:[#allocation27_spill]]  ;;  %s3976_s14 = sld [smem:[#allocation28_spill]] }
 0x2aa   : > { %s3977_s23 = sld [smem:[#allocation40_spill]]  ;;  %s3978_s18 = sld [smem:[#allocation31_spill]] }
 0x2ab   : > { %s3979_s12 = sld [smem:[#allocation32_spill]]  ;;  %s3980_s19 = sld [smem:[#allocation36_spill]] }
 0x2ac   : > { %s3981_s20 = sld [smem:[#allocation37_spill]]  ;;  %s3984_s28 = smov %s2513_s29 }
 0x2ad   : > { %s3983_s26 = smov %s3972_s8  ;;  %s3986_s15 = smov %s2529_s16 }
 0x2ae   :  { %37 = sbr.rel (!%p3722_p8) target bundleno = 30 (0x1e), region = 195 }
 0x2af   : > { %s3985_s29 = smov %s3974_s17 }
 0x2b0   : > { %s3987_s16 = smov %s3977_s23  ;;  %s3988_s17 = smov %s3978_s18 }
 0x2b1   : > { %s3989_s18 = smov %s3979_s12 }
 0x2b5   :  { %1555 = vsyncpa [#allocation3], 1 }
 0x2b6   :  { %1557 = vsyncpa [#allocation3 + $0x1], 1 }
 0x2b7   :  { %1558 = vsyncpa [#allocation6], 1 }
 0x2b8   :  { %1560 = vsyncpa [#allocation6 + $0x1], 1 }
 0x2b9   :  { %1561 = vsyncpa [#allocation9], 1 }
 0x2ba   :  { %1563 = vsyncpa [#allocation9 + $0x1], 1 }
 0x2bb   :  { %1564 = vsyncpa [#allocation12], 1 }
 0x2bc   :  { %1566 = vsyncpa [#allocation12 + $0x1], 1 }
 0x2bd   :  { %1567 = vsyncpa [#allocation4], 1 }
 0x2be   :  { %1569 = vsyncpa [#allocation4 + $0x1], 1 }

</bundles_post_ra>
